<compile_context>
chip_gen: v6e
topology: v6e:2x2x1
jax: 0.10.0
libtpu: 0.0.40
codegen_flags: <defaults>
</compile_context>

<pallas_src>
import functools

import jax
import jax.numpy as jnp
from jax.experimental import pallas as pl
from jax.experimental.pallas import tpu as pltpu


# ---------------------------------------------------------------------------
# VMEM limit: ~3/4 of physical VMEM (96 MiB on 128 MiB parts, 48 MiB on v7x).
# ---------------------------------------------------------------------------
def _vmem_limit_bytes():
    try:
        return int(pltpu.get_tpu_info().vmem_capacity_bytes * 3 // 4)
    except Exception:
        return None


_VMEM_LIMIT = _vmem_limit_bytes()


def _cparams(n_axes=1):
    return pltpu.CompilerParams(
        dimension_semantics=("parallel",) * n_axes,
        vmem_limit_bytes=_VMEM_LIMIT)


def _elu(v):
    # TODO(synk): jnp.expm1 would be marginally more precise near zero.
    return jnp.where(v > 0.0, v, jnp.exp(jnp.minimum(v, 0.0)) - 1.0)


# ---------------------------------------------------------------------------
# In-kernel helpers (all reshapes keep the minor/lane dim unchanged).
# ---------------------------------------------------------------------------
def _pad_hw(xv):
    """Zero-pad a (H, W, C) VMEM value by 1 on both spatial dims (in VMEM, so no
    HBM padding pass is ever issued)."""
    h, w, c = xv.shape
    zr = jnp.zeros((1, w, c), xv.dtype)
    xv = jnp.concatenate([zr, xv, zr], axis=0)
    zc = jnp.zeros((h + 2, 1, c), xv.dtype)
    return jnp.concatenate([zc, xv, zc], axis=1)


def _im2col3x3(xv):
    """(H, W, C) -> (H*W, 9*C) column matrix for a 3x3 / pad=1 conv (VMEM only)."""
    h, w, c = xv.shape
    xp = _pad_hw(xv)
    cols = [xp[kh:kh + h, kw:kw + w, :] for kh in range(3) for kw in range(3)]
    return jnp.concatenate(cols, axis=-1).reshape(h * w, 9 * c)


def _maxpool2_vmem(y):
    """2x2 / stride-2 max pool of a (H, W, C) VMEM value using only contiguous
    reshapes (minor dim preserved) and small non-minor reductions."""
    h, w, c = y.shape
    a = jnp.max(y.reshape(h // 2, 2, w, c), axis=1)               # row pairs
    a = jnp.max(a.reshape((h // 2) * (w // 2), 2, c), axis=1)     # column pairs
    return a.reshape(h // 2, w // 2, c)


# ---------------------------------------------------------------------------
# Pallas kernel 1: fused 3x3 conv (pad=1, stride=1) + bias + ReLU
#                  [+ optional fused MaxPool2d(2,2) second output]
# ---------------------------------------------------------------------------
def _conv3x3_kernel(x_ref, w_ref, b_ref, *o_refs, pool):
    xv = x_ref[0]                                         # (h, w, cin) bf16
    h, w, _ = xv.shape
    cout = w_ref.shape[-1]
    cols = _im2col3x3(xv)                                 # (h*w, 9*cin)
    acc = jnp.dot(cols, w_ref[...], preferred_element_type=jnp.float32)
    acc = jnp.maximum(acc + b_ref[...], 0.0)              # bias + ReLU in f32
    y = acc.astype(o_refs[0].dtype).reshape(h, w, cout)
    o_refs[0][...] = y[None]
    if pool:
        o_refs[1][...] = _maxpool2_vmem(y)[None]


# ---------------------------------------------------------------------------
# Pallas kernel 2: same conv, with the skip concatenation fused in
# (two inputs, weight split along Cin, two accumulating MXU dots).
# ---------------------------------------------------------------------------
def _conv3x3_cat_kernel(x_ref, s_ref, wx_ref, ws_ref, b_ref, o_ref):
    xv = x_ref[0]
    sv = s_ref[0]
    h, w, _ = xv.shape
    cout = wx_ref.shape[-1]
    acc = jnp.dot(_im2col3x3(xv), wx_ref[...], preferred_element_type=jnp.float32)
    acc = acc + jnp.dot(_im2col3x3(sv), ws_ref[...],
                        preferred_element_type=jnp.float32)
    acc = jnp.maximum(acc + b_ref[...], 0.0)
    o_ref[...] = acc.astype(o_ref.dtype).reshape(h, w, cout)[None]


def conv3x3(x, w, bias, *, pool=False, skip=None):
    """Fused Conv2d(3x3, pad=1) + bias + ReLU.

    pool=True  -> also returns the MaxPool2d(2,2) of the activation (2nd output).
    skip=t     -> computes the conv over channel-concat([x, skip]) without ever
                  materializing the concatenated tensor in HBM.
    x: (N,H,W,Cin), w: (3,3,Cin[+Cskip],Cout), bias: (Cout,).
    """
    assert not (pool and skip is not None)
    n, h, wd, cin = x.shape
    cout = w.shape[-1]
    xb = x.astype(jnp.bfloat16)
    b2 = bias.reshape(1, cout).astype(jnp.float32)

    if skip is None:
        wr = w.astype(jnp.bfloat16).reshape(9 * cin, cout)
        out_shape = [jax.ShapeDtypeStruct((n, h, wd, cout), jnp.bfloat16)]
        out_specs = [pl.BlockSpec((1, h, wd, cout), lambda i: (i, 0, 0, 0))]
        if pool:
            out_shape.append(
                jax.ShapeDtypeStruct((n, h // 2, wd // 2, cout), jnp.bfloat16))
            out_specs.append(
                pl.BlockSpec((1, h // 2, wd // 2, cout), lambda i: (i, 0, 0, 0)))
        return pl.pallas_call(
            functools.partial(_conv3x3_kernel, pool=pool),
            out_shape=tuple(out_shape) if pool else out_shape[0],
            grid_spec=pltpu.PrefetchScalarGridSpec(
                num_scalar_prefetch=0,
                grid=(n,),
                in_specs=[
                    pl.BlockSpec((1, h, wd, cin), lambda i: (i, 0, 0, 0)),
                    # TODO(synk): pipeline_mode=pl.Buffered(1) for constant blocks.
                    pl.BlockSpec((9 * cin, cout), lambda i: (0, 0)),
                    pl.BlockSpec((1, cout), lambda i: (0, 0)),
                ],
                out_specs=tuple(out_specs) if pool else out_specs[0],
            ),
            compiler_params=_cparams(),
        )(xb, wr, b2)

    # --- skip-concat fused variant (decoder first convs) ---
    cs = skip.shape[-1]
    sb = skip.astype(jnp.bfloat16)
    # torch.cat([x, skip], dim=1): x's channels first, skip's channels second.
    wx = w[:, :, :cin, :].astype(jnp.bfloat16).reshape(9 * cin, cout)
    ws = w[:, :, cin:, :].astype(jnp.bfloat16).reshape(9 * cs, cout)
    return pl.pallas_call(
        _conv3x3_cat_kernel,
        out_shape=jax.ShapeDtypeStruct((n, h, wd, cout), jnp.bfloat16),
        grid_spec=pltpu.PrefetchScalarGridSpec(
            num_scalar_prefetch=0,
            grid=(n,),
            in_specs=[
                pl.BlockSpec((1, h, wd, cin), lambda i: (i, 0, 0, 0)),
                pl.BlockSpec((1, h, wd, cs), lambda i: (i, 0, 0, 0)),
                pl.BlockSpec((9 * cin, cout), lambda i: (0, 0)),
                pl.BlockSpec((9 * cs, cout), lambda i: (0, 0)),
                pl.BlockSpec((1, cout), lambda i: (0, 0)),
            ],
            out_specs=pl.BlockSpec((1, h, wd, cout), lambda i: (i, 0, 0, 0)),
        ),
        compiler_params=_cparams(),
    )(xb, sb, wx, ws, b2)


# ---------------------------------------------------------------------------
# Pallas kernel 3: ConvTranspose2d(k=2, s=2).  Two dots (kh=0 / kh=1 tap rows,
# N = 2*Cout each) and an output layout (N, H, 2, W, 2*Cout) so the 2x2 pixel
# interleave needs no HBM transpose — the wrapper reshape is pure metadata.
# ---------------------------------------------------------------------------
def _convT2x2_kernel(x_ref, w0_ref, w1_ref, b_ref, o_ref):
    xv = x_ref[0]                                         # (h, w, cin) bf16
    h, w, cin = xv.shape
    n2 = w0_ref.shape[-1]                                 # 2*cout  [kw=0 | kw=1]
    xm = xv.reshape(h * w, cin)
    y0 = jnp.dot(xm, w0_ref[...], preferred_element_type=jnp.float32) + b_ref[...]
    y1 = jnp.dot(xm, w1_ref[...], preferred_element_type=jnp.float32) + b_ref[...]
    o_ref[0, :, 0, :, :] = y0.astype(o_ref.dtype).reshape(h, w, n2)  # rows 2i
    o_ref[0, :, 1, :, :] = y1.astype(o_ref.dtype).reshape(h, w, n2)  # rows 2i+1


def conv_transpose2x2(x, w, bias):
    """x: (N,H,W,Cin), w: (Cin,Cout,2,2) -> (N,2H,2W,Cout) bf16."""
    n, h, wd, cin = x.shape
    cout = w.shape[1]
    xb = x.astype(jnp.bfloat16)
    w0 = jnp.concatenate([w[:, :, 0, 0], w[:, :, 0, 1]], axis=1).astype(jnp.bfloat16)
    w1 = jnp.concatenate([w[:, :, 1, 0], w[:, :, 1, 1]], axis=1).astype(jnp.bfloat16)
    b2 = jnp.tile(bias, 2).reshape(1, 2 * cout).astype(jnp.float32)
    out = pl.pallas_call(
        _convT2x2_kernel,
        out_shape=jax.ShapeDtypeStruct((n, h, 2, wd, 2 * cout), jnp.bfloat16),
        grid_spec=pltpu.PrefetchScalarGridSpec(
            num_scalar_prefetch=0,
            grid=(n,),
            in_specs=[
                pl.BlockSpec((1, h, wd, cin), lambda i: (i, 0, 0, 0)),
                pl.BlockSpec((cin, 2 * cout), lambda i: (0, 0)),
                pl.BlockSpec((cin, 2 * cout), lambda i: (0, 0)),
                pl.BlockSpec((1, 2 * cout), lambda i: (0, 0)),
            ],
            out_specs=pl.BlockSpec((1, h, 2, wd, 2 * cout),
                                   lambda i: (i, 0, 0, 0, 0)),
        ),
        compiler_params=_cparams(),
    )(xb, w0, w1, b2)
    # (n, h, 2, w, 2*cout) -> (n, 2h, 2w, cout): contiguous => metadata reshape.
    return out.reshape(n, 2 * h, 2 * wd, cout)


# ---------------------------------------------------------------------------
# Pallas kernel 4: fused final block  conv(f->1) + ELU + conv(1->1) + ELU.
# Channel reduction hoisted out of the 9-tap loop; scalar params in SMEM.
# ---------------------------------------------------------------------------
def _final_convs_kernel(x_ref, w1_ref, sc_ref, o_ref):
    xv = x_ref[0]                                         # (h, w, f) bf16
    h, w, f = xv.shape
    xp = _pad_hw(xv).astype(jnp.float32)                  # (h+2, w+2, f)
    w1v = w1_ref[...].astype(jnp.float32)                 # (9, f)

    # conv1 (f -> 1): (h, w, f) VPU multiply-add partial, ONE lane reduce at end.
    acc3 = xp[0:h, 0:w, :] * w1v[0]
    for t in range(1, 9):
        kh, kw = t // 3, t % 3
        acc3 = acc3 + xp[kh:kh + h, kw:kw + w, :] * w1v[t]
    y1 = _elu(jnp.sum(acc3, axis=-1) + sc_ref[0])         # (h, w)

    # conv2 (1 -> 1): zero-pad y1 in VMEM, 9 scalar-weighted shifted adds.
    zr = jnp.zeros((1, w), jnp.float32)
    zc = jnp.zeros((h + 2, 1), jnp.float32)
    y1p = jnp.concatenate([zc, jnp.concatenate([zr, y1, zr], axis=0), zc], axis=1)
    acc2 = y1p[0:h, 0:w] * sc_ref[2]
    for t in range(1, 9):
        kh, kw = t // 3, t % 3
        acc2 = acc2 + y1p[kh:kh + h, kw:kw + w] * sc_ref[2 + t]
    o_ref[...] = _elu(acc2 + sc_ref[1])[None]


def final_convs(x, pf):
    """x: (N,H,W,f) -> (N,H,W) f32, matching conv_final of the PyTorch module."""
    n, h, wd, f = x.shape
    w1, b1 = pf[0]["w"], pf[0]["b"]                       # (3,3,f,1), (1,)
    w2, b2 = pf[1]["w"], pf[1]["b"]                       # (3,3,1,1), (1,)
    w1m = w1.reshape(9, f).astype(jnp.bfloat16)
    sc = jnp.concatenate([b1, b2, w2.reshape(9)]).astype(jnp.float32)   # (11,)
    return pl.pallas_call(
        _final_convs_kernel,
        out_shape=jax.ShapeDtypeStruct((n, h, wd), jnp.float32),
        grid_spec=pltpu.PrefetchScalarGridSpec(
            num_scalar_prefetch=0,
            grid=(n,),
            in_specs=[
                pl.BlockSpec((1, h, wd, f), lambda i: (i, 0, 0, 0)),
                pl.BlockSpec((9, f), lambda i: (0, 0)),
                pl.BlockSpec(memory_space=pltpu.MemorySpace.SMEM),
            ],
            out_specs=pl.BlockSpec((1, h, wd), lambda i: (i, 0, 0)),
        ),
        compiler_params=_cparams(),
    )(x.astype(jnp.bfloat16), w1m, sc)


# ---------------------------------------------------------------------------
# Layer glue
# ---------------------------------------------------------------------------
def center_crop(skip, h, w):
    """Mirror of the PyTorch center-crop logic (identity when sizes match;
    the general odd-difference case follows the same int() arithmetic)."""
    sh, sw = skip.shape[1], skip.shape[2]
    l1 = int((sh - h) / 2)
    u1 = int(sh - l1)
    l2 = int((sw - w) / 2)
    u2 = int(sw - l2)
    return skip[:, l1:u1, l2:u2, :]


# ---------------------------------------------------------------------------
# Parameter init (deterministic, PyTorch-like uniform(-1/sqrt(fan_in), ...))
# ---------------------------------------------------------------------------
def _init_conv(key, cin, cout, k=3):
    k1, k2 = jax.random.split(key)
    fan_in = cin * k * k
    bound = 1.0 / (fan_in ** 0.5)
    w = jax.random.uniform(k1, (k, k, cin, cout), jnp.float32, -bound, bound)
    b = jax.random.uniform(k2, (cout,), jnp.float32, -bound, bound)
    return {"w": w, "b": b}


def _init_convT(key, cin, cout):
    k1, k2 = jax.random.split(key)
    fan_in = cin * 2 * 2
    bound = 1.0 / (fan_in ** 0.5)
    w = jax.random.uniform(k1, (cin, cout, 2, 2), jnp.float32, -bound, bound)
    b = jax.random.uniform(k2, (cout,), jnp.float32, -bound, bound)
    return {"w": w, "b": b}


def init_unet_params(key, f=32):
    keys = iter(jax.random.split(key, 64))
    p = {}
    p["conv1"] = [_init_conv(next(keys), 1, f), _init_conv(next(keys), f, f)]
    p["conv2"] = [_init_conv(next(keys), f, 2 * f), _init_conv(next(keys), 2 * f, 2 * f)]
    p["conv3"] = [_init_conv(next(keys), 2 * f, 4 * f), _init_conv(next(keys), 4 * f, 4 * f)]
    p["conv4"] = [_init_conv(next(keys), 4 * f, 8 * f), _init_conv(next(keys), 8 * f, 8 * f)]
    p["conv5"] = [_init_conv(next(keys), 8 * f, 16 * f), _init_conv(next(keys), 16 * f, 16 * f)]
    p["up1"] = _init_convT(next(keys), 16 * f, 8 * f)
    p["convu1"] = [_init_conv(next(keys), 16 * f, 8 * f), _init_conv(next(keys), 8 * f, 8 * f)]
    p["up2"] = _init_convT(next(keys), 8 * f, 4 * f)
    p["convu2"] = [_init_conv(next(keys), 8 * f, 4 * f), _init_conv(next(keys), 4 * f, 4 * f)]
    p["up3"] = _init_convT(next(keys), 4 * f, 2 * f)
    p["convu3"] = [_init_conv(next(keys), 4 * f, 2 * f), _init_conv(next(keys), 2 * f, 2 * f)]
    p["up4"] = _init_convT(next(keys), 2 * f, f)
    p["convu4"] = [_init_conv(next(keys), 2 * f, f), _init_conv(next(keys), f, f)]
    p["convf"] = [_init_conv(next(keys), f, 1), _init_conv(next(keys), 1, 1)]
    return p


# ---------------------------------------------------------------------------
# UNet forward (matches the PyTorch module semantics)
# ---------------------------------------------------------------------------
def unet_forward(params, x_nchw):
    x = jnp.transpose(x_nchw, (0, 2, 3, 1)).astype(jnp.bfloat16)   # NCHW -> NHWC

    def enc(x, ps):
        x = conv3x3(x, ps[0]["w"], ps[0]["b"])
        return conv3x3(x, ps[1]["w"], ps[1]["b"], pool=True)       # (skip, pooled)

    c1, x = enc(x, params["conv1"])
    c2, x = enc(x, params["conv2"])
    c3, x = enc(x, params["conv3"])
    c4, x = enc(x, params["conv4"])
    x = conv3x3(x, params["conv5"][0]["w"], params["conv5"][0]["b"])
    x = conv3x3(x, params["conv5"][1]["w"], params["conv5"][1]["b"])

    def dec(x, up, ps, skip):
        x = conv_transpose2x2(x, up["w"], up["b"])
        s = center_crop(skip, x.shape[1], x.shape[2])
        x = conv3x3(x, ps[0]["w"], ps[0]["b"], skip=s)   # concat fused into conv
        return conv3x3(x, ps[1]["w"], ps[1]["b"])

    x = dec(x, params["up1"], params["convu1"], c4)
    x = dec(x, params["up2"], params["convu2"], c3)
    x = dec(x, params["up3"], params["convu3"], c2)
    x = dec(x, params["up4"], params["convu4"], c1)

    y = final_convs(x, params["convf"])                  # (N, H, W) f32
    return y[:, None, :, :]                              # -> NCHW (N, 1, H, W)


# ---------------------------------------------------------------------------
# Plain-JAX references for the self-checks
# ---------------------------------------------------------------------------
def _conv3x3_ref(x, w, b):
    n, h, wd, _ = x.shape
    cout = w.shape[-1]
    xp = jnp.pad(x.astype(jnp.bfloat16), ((0, 0), (1, 1), (1, 1), (0, 0)))
    acc = jnp.zeros((n, h, wd, cout), jnp.float32)
    for kh in range(3):
        for kw in range(3):
            acc = acc + jnp.einsum("nhwc,co->nhwo",
                                   xp[:, kh:kh + h, kw:kw + wd, :],
                                   w[kh, kw].astype(jnp.bfloat16),
                                   preferred_element_type=jnp.float32)
    return jnp.maximum(acc + b, 0.0)


if __name__ == "__main__":
    key = jax.random.PRNGKey(0)
    k_params, k_input, ka, kb, kc = jax.random.split(key, 5)

    # --- unit check 1: conv3x3 + fused maxpool ---
    xc = jax.random.normal(ka, (2, 8, 16, 7), jnp.float32)
    wc = jax.random.normal(kb, (3, 3, 7, 9), jnp.float32) * 0.2
    bc = jax.random.normal(kc, (9,), jnp.float32) * 0.2
    y, p = conv3x3(xc, wc, bc, pool=True)
    ref = _conv3x3_ref(xc, wc, bc)
    assert jnp.allclose(y.astype(jnp.float32), ref, atol=0.05, rtol=0.05), "conv3x3 mismatch"
    refp = ref.astype(jnp.bfloat16).reshape(2, 4, 2, 8, 2, 9).max(axis=(2, 4))
    assert jnp.allclose(p.astype(jnp.float32), refp.astype(jnp.float32),
                        atol=0.05, rtol=0.05), "fused maxpool mismatch"

    # --- unit check 2: conv3x3 with fused skip concat ---
    xs = jax.random.normal(ka, (2, 8, 8, 6), jnp.float32)
    ss = jax.random.normal(kb, (2, 8, 8, 10), jnp.float32)
    wcat = jax.random.normal(kc, (3, 3, 16, 12), jnp.float32) * 0.2
    bcat = jax.random.normal(ka, (12,), jnp.float32) * 0.2
    got = conv3x3(xs, wcat, bcat, skip=ss).astype(jnp.float32)
    refc = _conv3x3_ref(jnp.concatenate([xs, ss], axis=-1), wcat, bcat)
    assert jnp.allclose(got, refc, atol=0.05, rtol=0.05), "fused concat-conv mismatch"

    # --- unit check 3: ConvTranspose2d(2,2) ---
    xt = jax.random.normal(ka, (2, 4, 4, 6), jnp.float32)
    wt = jax.random.normal(kb, (6, 10, 2, 2), jnp.float32) * 0.3
    bt = jax.random.normal(kc, (10,), jnp.float32) * 0.3
    gotT = conv_transpose2x2(xt, wt, bt).astype(jnp.float32)
    refT = jnp.zeros((2, 8, 8, 10), jnp.float32)
    for kh in range(2):
        for kw in range(2):
            t = jnp.einsum("nhwc,co->nhwo", xt.astype(jnp.bfloat16),
                           wt[:, :, kh, kw].astype(jnp.bfloat16),
                           preferred_element_type=jnp.float32) + bt
            refT = refT.at[:, kh::2, kw::2, :].set(t)
    assert jnp.allclose(gotT, refT, atol=0.05, rtol=0.05), "conv-transpose mismatch"

    # --- unit check 4: fused final conv+ELU+conv+ELU ---
    xf = jax.random.normal(ka, (2, 8, 8, 8), jnp.float32)
    w1f = jax.random.normal(kb, (3, 3, 8, 1), jnp.float32) * 0.2
    b1f = jax.random.normal(kc, (1,), jnp.float32) * 0.2
    w2f = jax.random.normal(kb, (3, 3, 1, 1), jnp.float32) * 0.2
    b2f = jax.random.normal(kc, (1,), jnp.float32) * 0.2
    gotf = final_convs(xf, [{"w": w1f, "b": b1f}, {"w": w2f, "b": b2f}])
    xpb = jnp.pad(xf.astype(jnp.bfloat16), ((0, 0), (1, 1), (1, 1), (0, 0)))
    y1 = jnp.zeros((2, 8, 8), jnp.float32)
    for kh in range(3):
        for kw in range(3):
            y1 = y1 + jnp.einsum("nhwc,c->nhw",
                                 xpb[:, kh:kh + 8, kw:kw + 8, :],
                                 w1f[kh, kw, :, 0].astype(jnp.bfloat16),
                                 preferred_element_type=jnp.float32)
    y1 = jax.nn.elu(y1 + b1f[0])
    y1p = jnp.pad(y1, ((0, 0), (1, 1), (1, 1)))
    y2 = jnp.zeros((2, 8, 8), jnp.float32)
    for kh in range(3):
        for kw in range(3):
            y2 = y2 + y1p[:, kh:kh + 8, kw:kw + 8] * w2f[kh, kw, 0, 0]
    reff = jax.nn.elu(y2 + b2f[0])
    assert jnp.allclose(gotf, reff, atol=0.02, rtol=0.02), "final-conv mismatch"

    # --- full UNet forward ---
    F = 8                       # small f (module default is 32) for a light demo
    B, C, H, W = 2, 1, 16, 16   # UNet takes 1 input channel; H, W divisible by 16
    params = init_unet_params(k_params, f=F)
    x = jax.random.normal(k_input, (B, C, H, W), jnp.float32)

    out = jax.block_until_ready(jax.jit(unet_forward)(params, x))

    assert out.shape == (B, 1, H, W), out.shape
    assert bool(jnp.all(jnp.isfinite(out)))
    print("KERNEL_OK")
</pallas_src>

<mosaic_0001>
module attributes {stable_mosaic.version = 11 : i64} {
  func.func @_conv3x3_kernel(%arg0: i32, %arg1: memref<1x8x16x7xbf16, #tpu.memory_space<vmem>>, %arg2: memref<63x9xbf16, #tpu.memory_space<vmem>>, %arg3: memref<1x9xf32, #tpu.memory_space<vmem>>, %arg4: memref<1x8x16x9xbf16, #tpu.memory_space<vmem>>, %arg5: memref<1x4x8x9xbf16, #tpu.memory_space<vmem>>) attributes {dimension_semantics = [#tpu.dimension_semantics<parallel>], iteration_bounds = array<i64: 2>, scalar_prefetch = 0 : i64, scratch_operands = 0 : i64, tpu.core_type = #tpu.core_type<tc>, window_params = [{transform_indices = @transform_0, window_bounds = array<i64: 1, 8, 16, 7>}, {pipeline_mode = #tpu.pipeline_mode<synchronous>, transform_indices = @transform_1, window_bounds = array<i64: 63, 9>}, {pipeline_mode = #tpu.pipeline_mode<synchronous>, transform_indices = @transform_2, window_bounds = array<i64: 1, 9>}, {transform_indices = @transform_3, window_bounds = array<i64: 1, 8, 16, 9>}, {transform_indices = @transform_4, window_bounds = array<i64: 1, 4, 8, 9>}]} {
    %c0 = arith.constant 0 : index
    %c0_0 = arith.constant 0 : index
    %c0_1 = arith.constant 0 : index
    %c0_2 = arith.constant 0 : index
    %0 = vector.load %arg1[%c0, %c0_0, %c0_1, %c0_2] : memref<1x8x16x7xbf16, #tpu.memory_space<vmem>>, vector<1x8x16x7xbf16>
    %1 = vector.shape_cast %0 : vector<1x8x16x7xbf16> to vector<8x16x7xbf16>
    %cst = arith.constant 0.000000e+00 : bf16
    %2 = vector.broadcast %cst : bf16 to vector<1x16x7xbf16>
    %3 = tpu.concatenate %2, %1, %2 in 0 : vector<1x16x7xbf16>, vector<8x16x7xbf16>, vector<1x16x7xbf16> -> vector<10x16x7xbf16>
    %cst_3 = arith.constant 0.000000e+00 : bf16
    %4 = vector.broadcast %cst_3 : bf16 to vector<10x1x7xbf16>
    %5 = tpu.concatenate %4, %3, %4 in 1 : vector<10x1x7xbf16>, vector<10x16x7xbf16>, vector<10x1x7xbf16> -> vector<10x18x7xbf16>
    %6 = vector.extract_strided_slice %5 {offsets = [0, 0, 0], sizes = [8, 16, 7], strides = [1, 1, 1]} : vector<10x18x7xbf16> to vector<8x16x7xbf16>
    %7 = vector.extract_strided_slice %5 {offsets = [0, 1, 0], sizes = [8, 16, 7], strides = [1, 1, 1]} : vector<10x18x7xbf16> to vector<8x16x7xbf16>
    %8 = vector.extract_strided_slice %5 {offsets = [0, 2, 0], sizes = [8, 16, 7], strides = [1, 1, 1]} : vector<10x18x7xbf16> to vector<8x16x7xbf16>
    %9 = vector.extract_strided_slice %5 {offsets = [1, 0, 0], sizes = [8, 16, 7], strides = [1, 1, 1]} : vector<10x18x7xbf16> to vector<8x16x7xbf16>
    %10 = vector.extract_strided_slice %5 {offsets = [1, 1, 0], sizes = [8, 16, 7], strides = [1, 1, 1]} : vector<10x18x7xbf16> to vector<8x16x7xbf16>
    %11 = vector.extract_strided_slice %5 {offsets = [1, 2, 0], sizes = [8, 16, 7], strides = [1, 1, 1]} : vector<10x18x7xbf16> to vector<8x16x7xbf16>
    %12 = vector.extract_strided_slice %5 {offsets = [2, 0, 0], sizes = [8, 16, 7], strides = [1, 1, 1]} : vector<10x18x7xbf16> to vector<8x16x7xbf16>
    %13 = vector.extract_strided_slice %5 {offsets = [2, 1, 0], sizes = [8, 16, 7], strides = [1, 1, 1]} : vector<10x18x7xbf16> to vector<8x16x7xbf16>
    %14 = vector.extract_strided_slice %5 {offsets = [2, 2, 0], sizes = [8, 16, 7], strides = [1, 1, 1]} : vector<10x18x7xbf16> to vector<8x16x7xbf16>
    %15 = tpu.concatenate %6, %7, %8, %9, %10, %11, %12, %13, %14 in 2 : vector<8x16x7xbf16>, vector<8x16x7xbf16>, vector<8x16x7xbf16>, vector<8x16x7xbf16>, vector<8x16x7xbf16>, vector<8x16x7xbf16>, vector<8x16x7xbf16>, vector<8x16x7xbf16>, vector<8x16x7xbf16> -> vector<8x16x63xbf16>
    %16 = vector.shape_cast %15 : vector<8x16x63xbf16> to vector<128x63xbf16>
    %c0_4 = arith.constant 0 : index
    %c0_5 = arith.constant 0 : index
    %17 = vector.load %arg2[%c0_4, %c0_5] : memref<63x9xbf16, #tpu.memory_space<vmem>>, vector<63x9xbf16>
    %cst_6 = arith.constant dense<0.000000e+00> : vector<128x9xf32>
    %18 = tpu.matmul %16, %17, %cst_6 {dimension_numbers = #tpu.dot_dimension_numbers<[1], [0], [0], [1], [0, 0, 1, 1], [], []>} : vector<128x63xbf16>, vector<63x9xbf16>, vector<128x9xf32> -> vector<128x9xf32>
    %c0_7 = arith.constant 0 : index
    %c0_8 = arith.constant 0 : index
    %19 = vector.load %arg3[%c0_7, %c0_8] : memref<1x9xf32, #tpu.memory_space<vmem>>, vector<1x9xf32>
    %20 = vector.broadcast %19 : vector<1x9xf32> to vector<128x9xf32>
    %21 = arith.addf %18, %20 : vector<128x9xf32>
    %cst_9 = arith.constant 0.000000e+00 : f32
    %22 = vector.broadcast %cst_9 : f32 to vector<128x9xf32>
    %23 = arith.maximumf %21, %22 : vector<128x9xf32>
    %24 = arith.truncf %23 : vector<128x9xf32> to vector<128x9xbf16>
    %25 = vector.shape_cast %24 : vector<128x9xbf16> to vector<8x16x9xbf16>
    %26 = vector.shape_cast %25 : vector<8x16x9xbf16> to vector<1x8x16x9xbf16>
    %c0_10 = arith.constant 0 : index
    %c0_11 = arith.constant 0 : index
    %c0_12 = arith.constant 0 : index
    %c0_13 = arith.constant 0 : index
    %27 = vector.load %arg4[%c0_10, %c0_11, %c0_12, %c0_13] : memref<1x8x16x9xbf16, #tpu.memory_space<vmem>>, vector<1x8x16x9xbf16>
    tpu.vector_store %arg4[%c0_10, %c0_11, %c0_12, %c0_13], %26 {strides = array<i32>} : memref<1x8x16x9xbf16, #tpu.memory_space<vmem>>, vector<1x8x16x9xbf16>,
    %28 = vector.shape_cast %25 : vector<8x16x9xbf16> to vector<4x2x16x9xbf16>
    %cst_14 = arith.constant dense<0xFF80> : vector<4x16x9xbf16>
    %29 = vector.multi_reduction <maximumf>, %28, %cst_14 [1] : vector<4x2x16x9xbf16> to vector<4x16x9xbf16>
    %30 = vector.shape_cast %29 : vector<4x16x9xbf16> to vector<32x2x9xbf16>
    %cst_15 = arith.constant dense<0xFF80> : vector<32x9xbf16>
    %31 = vector.multi_reduction <maximumf>, %30, %cst_15 [1] : vector<32x2x9xbf16> to vector<32x9xbf16>
    %32 = vector.shape_cast %31 : vector<32x9xbf16> to vector<4x8x9xbf16>
    %33 = vector.shape_cast %32 : vector<4x8x9xbf16> to vector<1x4x8x9xbf16>
    %c0_16 = arith.constant 0 : index
    %c0_17 = arith.constant 0 : index
    %c0_18 = arith.constant 0 : index
    %c0_19 = arith.constant 0 : index
    %34 = vector.load %arg5[%c0_16, %c0_17, %c0_18, %c0_19] : memref<1x4x8x9xbf16, #tpu.memory_space<vmem>>, vector<1x4x8x9xbf16>
    tpu.vector_store %arg5[%c0_16, %c0_17, %c0_18, %c0_19], %33 {strides = array<i32>} : memref<1x4x8x9xbf16, #tpu.memory_space<vmem>>, vector<1x4x8x9xbf16>,
    return
  }
  func.func @transform_0(%arg0: i32) -> (i32, i32, i32, i32) {
    %c0_i32 = arith.constant 0 : i32
    %c0_i32_0 = arith.constant 0 : i32
    %c0_i32_1 = arith.constant 0 : i32
    %c0_i32_2 = arith.constant 0 : i32
    return %arg0, %c0_i32, %c0_i32_0, %c0_i32_1 : i32, i32, i32, i32
  }
  func.func @transform_1(%arg0: i32) -> (i32, i32) {
    %c0_i32 = arith.constant 0 : i32
    %c0_i32_0 = arith.constant 0 : i32
    %c0_i32_1 = arith.constant 0 : i32
    return %c0_i32, %c0_i32_0 : i32, i32
  }
  func.func @transform_2(%arg0: i32) -> (i32, i32) {
    %c0_i32 = arith.constant 0 : i32
    %c0_i32_0 = arith.constant 0 : i32
    %c0_i32_1 = arith.constant 0 : i32
    return %c0_i32, %c0_i32_0 : i32, i32
  }
  func.func @transform_3(%arg0: i32) -> (i32, i32, i32, i32) {
    %c0_i32 = arith.constant 0 : i32
    %c0_i32_0 = arith.constant 0 : i32
    %c0_i32_1 = arith.constant 0 : i32
    %c0_i32_2 = arith.constant 0 : i32
    return %arg0, %c0_i32, %c0_i32_0, %c0_i32_1 : i32, i32, i32, i32
  }
  func.func @transform_4(%arg0: i32) -> (i32, i32, i32, i32) {
    %c0_i32 = arith.constant 0 : i32
    %c0_i32_0 = arith.constant 0 : i32
    %c0_i32_1 = arith.constant 0 : i32
    %c0_i32_2 = arith.constant 0 : i32
    return %arg0, %c0_i32, %c0_i32_0, %c0_i32_1 : i32, i32, i32, i32
  }
}

</mosaic_0001>

<bundles_post_ra>
// kernel: tpu_custom_call.1
= control target key start
LH: loop header
LB: loop body
LE: loop exit
PB: predicated region body
PF: predicated region fallthrough
CT: control target
= control target key end

     0   :  { %10 = vsyncpa [#allocation3], 0  ;;  %s2951_s0 = inlined_call_operand.vmem [shape: bf16[2,8,16,7], index: 0, kind: input, shape index: {}]   ;;  %s2952_s1 = inlined_call_operand.vmem [shape: bf16[63,9], index: 1, kind: input, shape index: {}]   ;;  %s2953_s2 = inlined_call_operand.vmem [shape: f32[1,9], index: 2, kind: input, shape index: {}]   ;;  %s2954_s3 = inlined_call_operand.vmem [shape: bf16[2,8,16,9], index: 3, kind: output, shape index: {0}]   ;;  %s2955_s4 = inlined_call_operand.hbm [shape: bf16[2,4,8,9], index: 4, kind: output, shape index: {1}]  }
   0x1   :  { %12 = vsyncpa [#allocation3 + $0x1], 0  ;;  %s2286_s15 = smov 0   ;;  %s2288_s16 = smov 0  }
   0x2   :  { %s2290_s17 = smov 0   ;;  %s2292_s18 = smov 0  }
   0x3 LB: > { %s2307_s19 = sadd.s32 4294967295, %s2245_s18   ;;  %s1975_s20 = sadd.s32 4294967294, %s2245_s18   ;;  %s2245_s18 = sphi %s2292_s18, %s2963_s18   ;;  %s2241_s17 = sphi %s2290_s17, %s2962_s17   ;;  %s2237_s16 = sphi %s2288_s16, %s2961_s16   ;;  %s2233_s15 = sphi %s2286_s15, %s2960_s15  }
   0x4   : > { %s2311_s21 = sadd.s32 1, %s2245_s18   ;;  %s119_s22 = sadd.s32 1, %s2241_s17 }
   0x5   : > { %s116_s23 = ssub.s32 %s2245_s18, %s2311_s21  ;;  %p129_p0 = scmp.ne.s32.totalorder %s2241_s17, %s2237_s16 }
   0x6   : > { %p117_p1 = scmp.eq.s32.totalorder %s116_s23, 0  ;;  %p130_p2 = scmp.eq.s32.totalorder %s2307_s19, 1 }
   0x7   : > { %p135_p3 = scmp.ne.s32.totalorder %s2237_s16, %s2233_s15  ;;  %p136_p4 = scmp.eq.s32.totalorder %s1975_s20, 1 }
   0x8   : > { %s2322_s24 = scalar_select %p117_p1, %s2241_s17, %s119_s22  }
   0x9   : > { %p2324_p5 = por %p130_p2, %p129_p0  ;;  %p2328_p6 = por %p136_p4, %p135_p3 }
   0xa   : > { %p1978_p7 = scmp.ge.s32.totalorder %s2245_s18, 1  ;;  %p168_p8 = scmp.lt.s32.totalorder %s2245_s18, 3 }
   0xc   : > { %p169_p9 = pnand %p1978_p7, %p168_p8 }
   0xd   : > { %p199_p10 = scmp.lt.s32.totalorder (!%p169_p9), %s2307_s19, 1  ;;  %s2248_s6 = smov (!%p169_p9), 14  }
   0xe   : > { %172 = sbr.rel (%p169_p9) target bundleno = 576 (0x240), region = 32  ;;  %s2249_s7 = smov (!%p169_p9), 7  }
   0xf   : > { %s2250_s8 = smov (!%p169_p9), 21   ;;  %s2251_s9 = smov (!%p169_p9), 28  }
  0x10   : > { %s2252_s10 = smov (!%p169_p9), 35   ;;  %s2254_s20 = smov (!%p169_p9), 42  }
  0x11   : > { %s2256_s11 = smov (!%p169_p9), 56   ;;  %s2076_s13 = sshll.u32 (!%p169_p9), %s2307_s19, 8 }
  0x12   : > { %s2903_s23 = scalar_lea.hbm (!%p169_p9), %s2955_s4, %s2076_s13  ;;  %s2258_s30 = smov (!%p169_p9), [#allocation2]  }
  0x13   : > { %vm348_vm0 = vcmask 1040384   ;;  %vm349_vm1 = vsmask.f32 256  ;;  %v2247_v0 = vmov 0   ;;  %vm498_vm3 = vcmask 1046528   ;;  %s2346_s27 = scalar_select %p199_p10, %s2307_s19, 1 }
  0x14   : > { %v270_v1 = vrot.slane %v2247_v0, 7  ;;  %vm2334_vm2 = vmand %vm348_vm0, %vm349_vm1  ;;  %vm369_vm4 = vsmask.f32 7424  ;;  %vm844_vm5 = vcmask 1047552   ;;  %vm652_vm6 = vcmask 56320  }
  0x15   : > { %s2058_s28 = sshll.u32 %s2346_s27, 6  ;;  %vm669_vm7 = vcmask 113664   ;;  %vm686_vm8 = vcmask 171008   ;;  %vm703_vm9 = vcmask 228352   ;;  %vm720_vm10 = vcmask 285696   ;;  %s196_s27 = sand.u32 1, %s2237_s16  }
  0x16   : > { %v2341_v3 = vsel %vm2334_vm2, 0, %v270_v1  ;;  %v360_v4 = vsel %vm2334_vm2, %v270_v1, 0  ;;  %s2360_s5 = scalar_lea.vmem %s2951_s0, %s2058_s28  ;;  %vm737_vm11 = vcmask 343040   ;;  %vm754_vm12 = vcmask 400384   ;;  %s2911_s29 = scalar_lea.sflag [#allocation3], %s196_s27 }
  0x17   : > { %v499_v5 = vrot.slane %v2341_v3, 1  ;;  %v500_v6 = vrot.slane %v360_v4, 1  ;;  %v371_v7 = vshrl.u32 %v2341_v3, 16  ;;  %v373_v8 = vshll.u32 %v2341_v3, 16  ;;  %v2173_v13 = vld [vmem:[%s2360_s5 + $0x20] sm:$0xff]   ;;  %v2175_v21 = vld [vmem:[%s2360_s5 + $0x28] sm:$0xff]  }
  0x18   : > { %v378_v9 = vshll.u32 %v360_v4, 16  ;;  %v2174_v15 = vld [vmem:[%s2360_s5] sm:$0xff]   ;;  %v303_v16 = vshrl.u32 %v2173_v13, 16  ;;  %v306_v17 = vshll.u32 %v2173_v13, 16  ;;  %v2176_v22 = vld [vmem:[%s2360_s5 + $0x8] sm:$0xff]   ;;  %v2177_v24 = vld [vmem:[%s2360_s5 + $0x18] sm:$0xff]  }
  0x19   : > { %v2353_v10 = vsel %vm498_vm3, %v499_v5, %v500_v6  ;;  %v375_v11 = vrot.slane %v373_v8, 1  ;;  %v275_v19 = vshrl.u32 %v2174_v15, 16  ;;  %v278_v20 = vshll.u32 %v2174_v15, 16 }
  0x1a   : > { %523 = vrot.lane.b32.xlu0 %v2353_v10, %s2248_s6  ;;  %v380_v12 = vrot.slane %v378_v9, 1  ;;  %v305_v23 = vrot.slane %v303_v16, 7  ;;  %v310_v26 = vshrl.u32 %v2175_v21, 16  ;;  %v313_v27 = vshll.u32 %v2175_v21, 16 }
  0x1b   : > { %v376_v14 = vor.u32 %v375_v11, %v371_v7  ;;  %v277_v25 = vrot.slane %v275_v19, 7  ;;  %v282_v28 = vshrl.u32 %v2176_v22, 16  ;;  %v285_v30 = vshll.u32 %v2176_v22, 16  ;;  %v2178_v19 = vld [vmem:[%s2360_s5 + $0x10] sm:$0xff]  }
  0x1c   : > { %v308_v29 = vor.u32 %v306_v17, %v305_v23  ;;  %v296_v31 = vshrl.u32 %v2177_v24, 16  ;;  %v299_v32 = vshll.u32 %v2177_v24, 16  ;;  %v312_v34 = vrot.slane %v310_v26, 7 }
  0x1d   : > { %v2367_v18 = vsel %vm369_vm4, %v376_v14, %v380_v12  ;;  %v280_v33 = vor.u32 %v278_v20, %v277_v25  ;;  %v284_v35 = vrot.slane %v282_v28, 7  ;;  %v361_v36 = vsel %vm2334_vm2, %v277_v25, 0  ;;  %v2180_v20 = vld [vmem:[%s2360_s5 + $0x38] sm:$0xff]  }
  0x1e   : > { %466 = vrot.lane.b32.xlu0 %v2367_v18, %s2249_s7  ;;  %v2378_v37 = vsel %vm2334_vm2, 0, %v308_v29  ;;  %v298_v38 = vrot.slane %v296_v31, 7  ;;  %v315_v40 = vor.u32 %v313_v27, %v312_v34  ;;  %v503_v42 = vrot.slane %v361_v36, 1 }
  0x1f   : > { %548 = vrot.lane.b32.xlu1 %v2378_v37, %s2250_s8  ;;  %v2384_v39 = vsel %vm2334_vm2, 0, %v280_v33  ;;  %v287_v41 = vor.u32 %v285_v30, %v284_v35  ;;  %v365_v46 = vsel %vm2334_vm2, %v305_v23, 0  ;;  %v514_v52 = vrot.slane %v2378_v37, 1 }
  0x20   : > { %v301_v43 = vor.u32 %v299_v32, %v298_v38  ;;  %v364_v44 = vsel %vm2334_vm2, %v298_v38, 0  ;;  %v502_v45 = vrot.slane %v2384_v39, 1  ;;  %v2395_v47 = vsel %vm2334_vm2, 0, %v315_v40  ;;  %v2179_v38 = vld [vmem:[%s2360_s5 + $0x30] sm:$0xff]   ;;  %s2255_s5 = smov 49  }
  0x21   : > { %v2399_v48 = vsel %vm2334_vm2, 0, %v287_v41  ;;  %v512_v49 = vrot.slane %v364_v44, 1  ;;  %v426_v50 = vshll.u32 %v364_v44, 16  ;;  %v515_v54 = vrot.slane %v365_v46, 1 }
  0x22   : > { %540 = vrot.lane.b32.xlu0 %v2384_v39, %s2250_s8  ;;  %v2403_v51 = vsel %vm2334_vm2, 0, %v301_v43  ;;  %v2414_v57 = vsel %vm498_vm3, %v502_v45, %v503_v42  ;;  %v383_v58 = vshrl.u32 %v2384_v39, 16  ;;  %v385_v59 = vshll.u32 %v2384_v39, 16 }
  0x23   : > { %550 = vrot.lane.b32.xlu1 %v2395_v47, %s2250_s8  ;;  %v511_v53 = vrot.slane %v2403_v51, 1  ;;  %v419_v55 = vshrl.u32 %v2403_v51, 16  ;;  %v421_v56 = vshll.u32 %v2403_v51, 16  ;;  %v390_v60 = vshll.u32 %v361_v36, 16 }
  0x24   : > { %v428_v63 = vrot.slane %v426_v50, 1  ;;  %v397_v0 = vshll.u32 %v2399_v48, 16  ;;  %v387_v1 = vrot.slane %v385_v59, 1  ;;  %v362_v4 = vsel %vm2334_vm2, %v284_v35, 0 }
  0x25   : > { %v2419_v61 = vsel %vm498_vm3, %v511_v53, %v512_v49  ;;  %v423_v62 = vrot.slane %v421_v56, 1  ;;  %v433_v5 = vshll.u32 %v2378_v37, 16  ;;  %v2428_v6 = vsel %vm498_vm3, %v514_v52, %v515_v54 }
  0x26   : > { %542 = vrot.lane.b32.xlu0 %v2399_v48, %s2250_s8  ;;  %v392_v8 = vrot.slane %v390_v60, 1  ;;  %v388_v9 = vor.u32 %v387_v1, %v383_v58  ;;  %v431_v11 = vshrl.u32 %v2378_v37, 16  ;;  %v438_v13 = vshll.u32 %v365_v46, 16 }
  0x27   : > { %531 = vrot.lane.b32.xlu1 %v2419_v61, %s2248_s6  ;;  %v424_v7 = vor.u32 %v423_v62, %v419_v55  ;;  %v435_v12 = vrot.slane %v433_v5, 1  ;;  %v395_v15 = vshrl.u32 %v2399_v48, 16  ;;  %v399_v16 = vrot.slane %v397_v0, 1 }
  0x28   : > { %v402_v17 = vshll.u32 %v362_v4, 16  ;;  %v393_v21 = vsel %vm369_vm4, %v388_v9, %v392_v8  ;;  %v440_v23 = vrot.slane %v438_v13, 1  ;;  %v445_v24 = vshll.u32 %v2395_v47, 16 }
  0x29   : > { %v2434_v14 = vsel %vm369_vm4, %v424_v7, %v428_v63  ;;  %v436_v22 = vor.u32 %v435_v12, %v431_v11  ;;  %v400_v25 = vor.u32 %v399_v16, %v395_v15  ;;  %v2447_v27 = vsel %vm2334_vm2, %v312_v34, 0  ;;  %v2181_v7 = vld [vmem:[%s2952_s1 + $0x18] sm:$0xff]  }
  0x2a   : > { %525 = vrot.lane.b32.xlu0 %v2414_v57, %s2248_s6  ;;  %v404_v26 = vrot.slane %v402_v17, 1  ;;  %v289_v28 = vshrl.u32 %v2178_v19, 16  ;;  %v324_v29 = vshrl.u32 %v2180_v20, 16  ;;  %v443_v30 = vshrl.u32 %v2395_v47, 16 }
  0x2b   : > { %533 = vrot.lane.b32.xlu1 %v2428_v6, %s2248_s6  ;;  %v327_v31 = vshll.u32 %v2180_v20, 16  ;;  %v2453_v32 = vsel %vm369_vm4, %v436_v22, %v440_v23  ;;  %v447_v33 = vrot.slane %v445_v24, 1  ;;  %v450_v35 = vshll.u32 %v2447_v27, 16  ;;  %v2182_v22 = vld [vmem:[%s2952_s1 + $0x10] sm:$0xff]  }
  0x2c   : > { %v326_v36 = vrot.slane %v324_v29, 7  ;;  %v2457_v34 = vsel %vm369_vm4, %v400_v25, %v404_v26  ;;  %v291_v40 = vrot.slane %v289_v28, 7  ;;  %v292_v41 = vshll.u32 %v2178_v19, 16  ;;  %v2183_v28 = vld [vmem:[%s2952_s1 + $0x8] sm:$0xff]  }
  0x2d   : > { %v505_v43 = vrot.slane %v2399_v48, 1  ;;  %v506_v44 = vrot.slane %v362_v4, 1  ;;  %v448_v45 = vor.u32 %v447_v33, %v443_v30  ;;  %v452_v46 = vrot.slane %v450_v35, 1  ;;  %v2184_v35 = vld [vmem:[%s2952_s1] sm:$0xff]  }
  0x2e   : > { %474 = vrot.lane.b32.xlu0 %v2434_v14, %s2249_s7  ;;  %v329_v42 = vor.u32 %v327_v31, %v326_v36  ;;  %v317_v49 = vshrl.u32 %v2179_v38, 16  ;;  %v368_v52 = vsel %vm2334_vm2, %v326_v36, 0  ;;  %v294_v53 = vor.u32 %v292_v41, %v291_v40 }
  0x2f   : > { %468 = vrot.lane.b32.xlu1 %v393_v21, %s2249_s7  ;;  %v564_v56 = vshll.u32 %v368_v52, 16  ;;  %v586_v59 = vrot.slane %v368_v52, 1  ;;  %v2479_v60 = vsel %vm498_vm3, %v505_v43, %v506_v44  ;;  %v2482_v62 = vsel %vm369_vm4, %v448_v45, %v452_v46 }
  0x30   : > { %v2467_v50 = vsel %vm2334_vm2, 0, %v329_v42  ;;  %v319_v0 = vrot.slane %v317_v49, 7  ;;  %v320_v1 = vshll.u32 %v2179_v38, 16  ;;  %v2253_v9 = vmov 65535  }
  0x31   : > { %v557_v54 = vshrl.u32 %v2467_v50, 16  ;;  %v559_v55 = vshll.u32 %v2467_v50, 16  ;;  %v585_v58 = vrot.slane %v2467_v50, 1  ;;  %v566_v4 = vrot.slane %v564_v56, 1 }
  0x32   : > { %568 = vrot.lane.b32.xlu0 %v393_v21, %s2251_s9  ;;  %v845_v11 = vsel %vm498_vm3, 4294967295, %v2253_v9  ;;  %v517_v12 = vrot.slane %v2395_v47, 1  ;;  %v518_v13 = vrot.slane %v2447_v27, 1  ;;  %v322_v19 = vor.u32 %v320_v1, %v319_v0 }
  0x33   : > { %476 = vrot.lane.b32.xlu1 %v2453_v32, %s2249_s7  ;;  %v561_v63 = vrot.slane %v559_v55, 1  ;;  %v2485_v5 = vsel %vm498_vm3, %v585_v58, %v586_v59  ;;  %v846_v16 = vsel %vm844_vm5, %v845_v11, 0  ;;  %v363_v21 = vsel %vm2334_vm2, %v291_v40, 0 }
  0x34   : > { %v848_v20 = vand.u32 %v2181_v7, %v846_v16  ;;  %v519_v23 = vsel %vm498_vm3, %v517_v12, %v518_v13  ;;  %v414_v26 = vshll.u32 %v363_v21, 16  ;;  %v2518_v27 = vsel %vm2334_vm2, 0, %v322_v19 }
  0x35   : > { %v562_v8 = vor.u32 %v561_v63, %v557_v54  ;;  %v457_v29 = vshll.u32 %v2518_v27, 16  ;;  %v367_v33 = vsel %vm2334_vm2, %v319_v0, 0  ;;  %v455_v36 = vshrl.u32 %v2518_v27, 16 }
  0x36   : > { %570 = vrot.lane.b32.xlu0 %v2457_v34, %s2251_s9  ;;  %2089 = vmatprep.subr.bf16.mxu0 %v848_v20  ;;  %v416_v31 = vrot.slane %v414_v26, 1  ;;  %v462_v40 = vshll.u32 %v367_v33, 16  ;;  %v509_v45 = vrot.slane %v363_v21, 1  ;;  %v520_v49 = vrot.slane %v2518_v27, 1 }
  0x37   : > { %576 = vrot.lane.b32.xlu1 %v2453_v32, %s2251_s9  ;;  %v2502_v15 = vsel %vm369_vm4, %v562_v8, %v566_v4  ;;  %2090 = vmatpush3.bf16.msra.mxu0 %v848_v20  ;;  %v459_v38 = vrot.slane %v457_v29, 1  ;;  %v521_v52 = vrot.slane %v367_v33, 1  ;;  %vm771_vm13 = vcmask 457728  }
  0x38   : > { %2091 = vmatprep.subr.bf16.mxu0 %v2182_v22  ;;  %2113 = vmatprep.subr.bf16.mxu1 %v848_v20  ;;  %v464_v42 = vrot.slane %v462_v40, 1  ;;  %vm826_vm14 = vcmask 515072   ;;  %vm1027_vm15 = vcmask 68608   ;;  %vm1044_vm0 = vcmask 72704  }
  0x39   : > { %2117 = vmatpush3.bf16.msra.mxu1 %v848_v20  ;;  %v460_v41 = vor.u32 %v459_v38, %v455_v36  ;;  %vm1274_vm1 = vcmask 65536   ;;  %vm1825_vm5 = vcmask 1044484  }
  0x3a   : > { %588 = vrot.lane.b32.xlu0 %v2414_v57, %s2252_s10  ;;  %v2492_v57 = vsel %vm2334_vm2, 0, %v294_v53  ;;  %2114 = vmatprep.subr.bf16.mxu1 %v2182_v22  ;;  %v522_v53 = vsel %vm498_vm3, %v520_v49, %v521_v52  ;;  %vm1819_vm2 = vcmask 1041409  }
  0x3b   : > { %578 = vrot.lane.b32.xlu1 %v2482_v62, %s2251_s9  ;;  %v409_v17 = vshll.u32 %v2492_v57, 16  ;;  %v407_v24 = vshrl.u32 %v2492_v57, 16  ;;  %2092 = vmatpush3.bf16.msra.mxu0 %v2182_v22  ;;  %v465_v43 = vsel %vm369_vm4, %v460_v41, %v464_v42  ;;  %v508_v44 = vrot.slane %v2492_v57, 1 }
  0x3c   : > { %2093 = vmatprep.subr.bf16.mxu0 %v2183_v28 }
  0x3d   : > { %v411_v25 = vrot.slane %v409_v17, 1  ;;  %2118 = vmatpush3.bf16.msra.mxu1 %v2182_v22  ;;  %v510_v46 = vsel %vm498_vm3, %v508_v44, %v509_v45  ;;  %vm1821_vm3 = vcmask 1042434  }
  0x3e   : > { %590 = vrot.lane.b32.xlu0 %v2479_v60, %s2252_s10  ;;  %2115 = vmatprep.subr.bf16.mxu1 %v2183_v28 }
  0x3f   : > { %596 = vrot.lane.b32.xlu1 %v2428_v6, %s2252_s10  ;;  %v412_v30 = vor.u32 %v411_v25, %v407_v24  ;;  %2094 = vmatpush3.bf16.msra.mxu0 %v2183_v28 }
  0x40   : > { %2095 = vmatprep.subr.bf16.mxu0 %v2184_v35 }
  0x41   : > { %v417_v2 = vsel %vm369_vm4, %v412_v30, %v416_v31  ;;  %2119 = vmatpush3.bf16.msra.mxu1 %v2183_v28  ;;  %vm1823_vm4 = vcmask 1043459  }
  0x42   : > { %604 = vrot.lane.b32.xlu0 %v2399_v48, %s2254_s20  ;;  %2116 = vmatprep.subr.bf16.mxu1 %v2184_v35 }
  0x43   : > { %598 = vrot.lane.b32.xlu1 %v519_v23, %s2252_s10  ;;  %2096 = vmatpush3.bf16.msra.mxu0 %v2184_v35 }
  0x45   : > { %2120 = vmatpush3.bf16.msra.mxu1 %v2184_v35 }
  0x46   : > { %606 = vrot.lane.b32.xlu0 %v2492_v57, %s2254_s20 }
  0x47   : > { %612 = vrot.lane.b32.xlu1 %v2395_v47, %s2254_s20 }
  0x4a   : > { %620 = vrot.lane.b32.xlu0 %v2457_v34, %s2255_s5 }
  0x4b   : > { %614 = vrot.lane.b32.xlu1 %v2518_v27, %s2254_s20 }
  0x4e   : > { %622 = vrot.lane.b32.xlu0 %v417_v2, %s2255_s5 }
  0x4f   : > { %628 = vrot.lane.b32.xlu1 %v2482_v62, %s2255_s5 }
  0x52   : > { %636 = vrot.lane.b32.xlu0 %v2479_v60, %s2256_s11 }
  0x53   : > { %630 = vrot.lane.b32.xlu1 %v465_v43, %s2255_s5 }
  0x56   : > { %470 = vrot.lane.b32.xlu0 %v2457_v34, %s2249_s7 }
  0x57   : > { %644 = vrot.lane.b32.xlu1 %v519_v23, %s2256_s11 }
  0x5a   : > { %638 = vrot.lane.b32.xlu0 %v510_v46, %s2256_s11 }
  0x5b   : > { %478 = vrot.lane.b32.xlu1 %v2482_v62, %s2249_s7 }
  0x5e   : > { %472 = vrot.lane.b32.xlu0 %v417_v2, %s2249_s7 }
  0x5f   : > { %646 = vrot.lane.b32.xlu1 %v522_v53, %s2256_s11 }
  0x62   : > { %527 = vrot.lane.b32.xlu0 %v2479_v60, %s2248_s6 }
  0x63   : > { %480 = vrot.lane.b32.xlu1 %v465_v43, %s2249_s7 }
  0x66   : > { %529 = vrot.lane.b32.xlu0 %v510_v46, %s2248_s6 }
  0x67   : > { %535 = vrot.lane.b32.xlu1 %v519_v23, %s2248_s6 }
  0x6a   : > { %544 = vrot.lane.b32.xlu0 %v2492_v57, %s2250_s8 }
  0x6b   : > { %537 = vrot.lane.b32.xlu1 %v522_v53, %s2248_s6 }
  0x6e   : > { %546 = vrot.lane.b32.xlu0 %v2403_v51, %s2250_s8 }
  0x6f   : > { %552 = vrot.lane.b32.xlu1 %v2518_v27, %s2250_s8 }
  0x72   : > { %572 = vrot.lane.b32.xlu0 %v417_v2, %s2251_s9 }
  0x73   : > { %554 = vrot.lane.b32.xlu1 %v2467_v50, %s2250_s8 }
  0x76   : > { %574 = vrot.lane.b32.xlu0 %v2434_v14, %s2251_s9 }
  0x77   : > { %580 = vrot.lane.b32.xlu1 %v465_v43, %s2251_s9 }
  0x7a   : > { %592 = vrot.lane.b32.xlu0 %v510_v46, %s2252_s10 }
  0x7b   : > { %582 = vrot.lane.b32.xlu1 %v2502_v15, %s2251_s9 }
  0x7e   : > { %594 = vrot.lane.b32.xlu0 %v2419_v61, %s2252_s10 }
  0x7f   : > { %600 = vrot.lane.b32.xlu1 %v522_v53, %s2252_s10 }
  0x82   : > { %608 = vrot.lane.b32.xlu0 %v2403_v51, %s2254_s20 }
  0x83   : > { %602 = vrot.lane.b32.xlu1 %v2485_v5, %s2252_s10  ;;  %s2704_s10 = scalar_lea.vmem %s2954_s3, %s2058_s28  ;;  %s1979_s28 = sshll.u32 %s196_s27, 4 }
  0x84   : > { %s2821_s12 = scalar_lea.vmem [#allocation2], %s1979_s28 }
  0x85   : > { %s1888_s14 = sshll.u32 %s2821_s12, 4  ;;  %s2905_s14 = int_to_ptr.vmem [resolvable:$true] %s1888_s14 }
  0x86   : > { %610 = vrot.lane.b32.xlu0 %v2378_v37, %s2254_s20  ;;  %s2185_s19 = scalar_lea.vmem %s2905_s14, 256 }
  0x87   : > { %616 = vrot.lane.b32.xlu1 %v2467_v50, %s2254_s20  ;;  %p2186_p11 = scmp.ne.s32.totalorder %s2905_s14, %s2185_s19 }
  0x89   : > { %p2187_p12 = pnand %p2186_p11, %p2324_p5 }
  0x8a   : > { %624 = vrot.lane.b32.xlu0 %v2434_v14, %s2255_s5 }
  0x8b   : > { %618 = vrot.lane.b32.xlu1 %v2341_v3, %s2254_s20  ;;  %p2188_p13 = pneg %p2187_p12 }
  0x8c   : > { %v524_v34 = vpop.permute.xlu0 %523 }
  0x8e   : > { %626 = vrot.lane.b32.xlu0 %v2453_v32, %s2255_s5 }
  0x8f   : > { %632 = vrot.lane.b32.xlu1 %v2502_v15, %s2255_s5 }
  0x90   : > { %v467_v54 = vpop.permute.xlu0 %466 }
  0x91   : > { %v549_v55 = vpop.permute.xlu1 %548  ;;  %v654_v11 = vsel %vm652_vm6, %v2341_v3, %v467_v54 }
  0x92   : > { %640 = vrot.lane.b32.xlu0 %v2419_v61, %s2256_s11  ;;  %v671_v13 = vsel %vm669_vm7, %v654_v11, %v524_v34 }
  0x93   : > { %634 = vrot.lane.b32.xlu1 %v2367_v18, %s2255_s5  ;;  %s2189_s5 = sshll.u32 %s2258_s30, 4  ;;  %s2190_s5 = int_to_ptr.vmem [resolvable:$false] %s2189_s5 }
  0x94   : > { %v541_v56 = vpop.permute.xlu0 %540  ;;  %p2192_p0 = scmp.lt.s32.totalorder %s2905_s14, %s2190_s5 }
  0x95   : > { %v2605_v14 = vpop.permute.xlu1 %550  ;;  %v688_v16 = vsel %vm686_vm8, %v671_v13, %v541_v56 }
  0x96   : > { %642 = vrot.lane.b32.xlu0 %v2428_v6, %s2256_s11 }
  0x97   : > { %648 = vrot.lane.b32.xlu1 %v2485_v5, %s2256_s11 }
  0x98   : > { %v543_v50 = vpop.permute.xlu0 %542 }
  0x99   : > { %v532_v32 = vpop.permute.xlu1 %531 }
  0x9b   : > { %650 = vrot.lane.b32.xlu1 %v2353_v10, %s2256_s11  ;;  %s2191_s11 = scalar_lea.vmem %s2190_s5, 512 }
  0x9c   : > { %v526_v58 = vpop.permute.xlu0 %525  ;;  %p2193_p1 = scmp.lt.s32.totalorder %s2191_s11, %s2185_s19 }
  0x9d   : > { %v534_v61 = vpop.permute.xlu1 %533 }
  0x9e   : > { %p2194_p2 = por %p2193_p1, %p2192_p0 }
  0xa0   : > { %v475_v59 = vpop.permute.xlu0 %474  ;;  %p2195_p3 = pnand %p2194_p2, %p2188_p13 }
  0xa1   : > { %v469_v60 = vpop.permute.xlu1 %468  ;;  %v662_v20 = vsel %vm652_vm6, %v2403_v51, %v475_v59 }
  0xa2   : > { %v656_v17 = vsel %vm652_vm6, %v2384_v39, %v469_v60  ;;  %v679_v25 = vsel %vm669_vm7, %v662_v20, %v532_v32 }
  0xa3   : > { %v673_v22 = vsel %vm669_vm7, %v656_v17, %v526_v58  ;;  %v696_v29 = vsel %vm686_vm8, %v679_v25, %v549_v55 }
  0xa4   : > { %v569_v62 = vpop.permute.xlu0 %568  ;;  %v690_v51 = vsel %vm686_vm8, %v673_v22, %v543_v50 }
  0xa5   : > { %v477_v63 = vpop.permute.xlu1 %476  ;;  %v705_v3 = vsel %vm703_vm9, %v688_v16, %v569_v62 }
  0xa6   : > { %v664_v36 = vsel %vm652_vm6, %v2378_v37, %v477_v63 }
  0xa7   : > { %v681_v44 = vsel %vm669_vm7, %v664_v36, %v534_v61 }
  0xa8   : > { %v571_v18 = vpop.permute.xlu0 %570  ;;  %v698_v52 = vsel %vm686_vm8, %v681_v44, %v2605_v14 }
  0xa9   : > { %v577_v0 = vpop.permute.xlu1 %576  ;;  %v707_v35 = vsel %vm703_vm9, %v690_v51, %v571_v18 }
  0xaa   : > { %v713_v31 = vsel %vm703_vm9, %v696_v29, %v577_v0 }
  0xac   : > { %v589_v1 = vpop.permute.xlu0 %588 }
  0xad   : > { %v579_v6 = vpop.permute.xlu1 %578  ;;  %v722_v21 = vsel %vm720_vm10, %v705_v3, %v589_v1 }
  0xae   : > { %v715_v34 = vsel %vm703_vm9, %v698_v52, %v579_v6 }
  0xb0   : > { %v591_v4 = vpop.permute.xlu0 %590 }
  0xb1   : > { %v597_v7 = vpop.permute.xlu1 %596  ;;  %v724_v40 = vsel %vm720_vm10, %v707_v35, %v591_v4 }
  0xb2   : > { %v730_v38 = vsel %vm720_vm10, %v713_v31, %v597_v7 }
  0xb4   : > { %v605_v8 = vpop.permute.xlu0 %604 }
  0xb5   : > { %v599_v9 = vpop.permute.xlu1 %598  ;;  %v739_v23 = vsel %vm737_vm11, %v722_v21, %v605_v8 }
  0xb6   : > { %v732_v55 = vsel %vm720_vm10, %v715_v34, %v599_v9 }
  0xb8   : > { %v607_v5 = vpop.permute.xlu0 %606 }
  0xb9   : > { %v613_v10 = vpop.permute.xlu1 %612  ;;  %v741_v41 = vsel %vm737_vm11, %v724_v40, %v607_v5 }
  0xba   : > { %v747_v2 = vsel %vm737_vm11, %v730_v38, %v613_v10 }
  0xbc   : > { %v621_v12 = vpop.permute.xlu0 %620 }
  0xbd   : > { %v615_v15 = vpop.permute.xlu1 %614  ;;  %v756_v39 = vsel %vm754_vm12, %v739_v23, %v621_v12 }
  0xbe   : > { %v749_v56 = vsel %vm737_vm11, %v732_v55, %v615_v15 }
  0xc0   : > { %v623_v19 = vpop.permute.xlu0 %622 }
  0xc1   : > { %v629_v24 = vpop.permute.xlu1 %628  ;;  %v758_v45 = vsel %vm754_vm12, %v741_v41, %v623_v19 }
  0xc2   : > { %v764_v42 = vsel %vm754_vm12, %v747_v2, %v629_v24 }
  0xc4   : > { %v637_v26 = vpop.permute.xlu0 %636 }
  0xc5   : > { %v773_v28 = vsel %vm771_vm13, %v756_v39, %v637_v26  ;;  %v631_v30 = vpop.permute.xlu1 %630 }
  0xc6   : > { %2097 = vmatprep.mubr.msk.bf16.mxu0 %vm826_vm14, %v773_v28  ;;  %v766_v50 = vsel %vm754_vm12, %v749_v56, %v631_v30 }
  0xc8   : > { %v471_v33 = vpop.permute.xlu0 %470 }
  0xc9   : > { %v645_v43 = vpop.permute.xlu1 %644  ;;  %v658_v17 = vsel %vm652_vm6, %v2399_v48, %v471_v33 }
  0xca   : > { %v781_v49 = vsel %vm771_vm13, %v764_v42, %v645_v43 }
  0xcb   : > { %2105 = vmatprep.mubr.msk.bf16.mxu1 %vm826_vm14, %v781_v49 }
  0xcc   : > { %v639_v46 = vpop.permute.xlu0 %638 }
  0xcd   : > { %v775_v37 = vsel %vm771_vm13, %v758_v45, %v639_v46  ;;  %v479_v53 = vpop.permute.xlu1 %478 }
  0xce   : > { %2098 = vmatmul.mubr.msk.bf16.vlgmr.msra.gmra.mxu0 %vm826_vm14, %v775_v37 }
  0xd0   : > { %v473_v54 = vpop.permute.xlu0 %472 }
  0xd1   : > { %v647_v32 = vpop.permute.xlu1 %646  ;;  %v660_v3 = vsel %vm652_vm6, %v2492_v57, %v473_v54  ;;  %v666_v57 = vsel %vm652_vm6, %v2395_v47, %v479_v53 }
  0xd2   : > { %v783_v61 = vsel %vm771_vm13, %v766_v50, %v647_v32  ;;  %v2695_v50 = vld [vmem:[%s2953_s2] ss:$0 sm:$0xff] }
  0xd3   : > { %2106 = vmatmul.mubr.msk.bf16.vlgmr.msra.gmra.mxu1 %vm826_vm14, %v783_v61 }
  0xd4   : > { %v528_v58 = vpop.permute.xlu0 %527 }
  0xd5   : > { %v481_v59 = vpop.permute.xlu1 %480  ;;  %v675_v19 = vsel %vm669_vm7, %v658_v17, %v528_v58 }
  0xd6   : > { %v668_v41 = vsel %vm652_vm6, %v2518_v27, %v481_v59  ;;  %vm1827_vm6 = vcmask 1045509  }
  0xd8   : > { %v530_v60 = vpop.permute.xlu0 %529 }
  0xd9   : > { %v536_v62 = vpop.permute.xlu1 %535  ;;  %v677_v25 = vsel %vm669_vm7, %v660_v3, %v530_v60 }
  0xda   : > { %v683_v31 = vsel %vm669_vm7, %v666_v57, %v536_v62 }
  0xdc   : > { %v545_v14 = vpop.permute.xlu0 %544 }
  0xdd   : > { %v538_v63 = vpop.permute.xlu1 %537  ;;  %v692_v21 = vsel %vm686_vm8, %v675_v19, %v545_v14  ;;  %v2257_v14 = vmov 1966171168  }
  0xde   : > { %v685_v44 = vsel %vm669_vm7, %v668_v41, %v538_v63  ;;  %v1080_v63 = vunpack.c.l.s4 %v2257_v14  ;;  %vm1829_vm7 = vcmask 1046534  }
  0xe0   : > { %v547_v18 = vpop.permute.xlu0 %546 }
  0xe1   : > { %v553_v0 = vpop.permute.xlu1 %552  ;;  %v694_v48 = vsel %vm686_vm8, %v677_v25, %v547_v18  ;;  %v1082_v18 = vlaneseq }
  0xe2   : > { %v700_v35 = vsel %vm686_vm8, %v683_v31, %v553_v0 }
  0xe4   : > { %v573_v1 = vpop.permute.xlu0 %572 }
  0xe5   : > { %v555_v6 = vpop.permute.xlu1 %554  ;;  %v709_v23 = vsel %vm703_vm9, %v692_v21, %v573_v1 }
  0xe6   : > { %v702_v46 = vsel %vm686_vm8, %v685_v44, %v555_v6  ;;  %vm1831_vm8 = vcmask 1047559  }
  0xe8   : > { %v575_v4 = vpop.permute.xlu0 %574 }
  0xe9   : > { %v581_v7 = vpop.permute.xlu1 %580  ;;  %v711_v29 = vsel %vm703_vm9, %v694_v48, %v575_v4 }
  0xea   : > { %v717_v40 = vsel %vm703_vm9, %v700_v35, %v581_v7 }
  0xec   : > { %v593_v8 = vpop.permute.xlu0 %592 }
  0xed   : > { %v583_v9 = vpop.permute.xlu1 %582  ;;  %v726_v24 = vsel %vm720_vm10, %v709_v23, %v593_v8 }
  0xee   : > { %v719_v52 = vsel %vm703_vm9, %v702_v46, %v583_v9 }
  0xf0   : > { %v595_v5 = vpop.permute.xlu0 %594 }
  0xf1   : > { %v601_v11 = vpop.permute.xlu1 %600  ;;  %v728_v33 = vsel %vm720_vm10, %v711_v29, %v595_v5 }
  0xf2   : > { %v734_v42 = vsel %vm720_vm10, %v717_v40, %v601_v11  ;;  %v1081_v11 = vunpack.c.0.s8 %v1080_v63 }
  0xf4   : > { %v609_v10 = vpop.permute.xlu0 %608 }
  0xf5   : > { %v603_v12 = vpop.permute.xlu1 %602  ;;  %v743_v39 = vsel %vm737_vm11, %v726_v24, %v609_v10  ;;  %v1083_v10 = vshrl.u32 %v1082_v18, 7 }
  0xf6   : > { %v736_v53 = vsel %vm720_vm10, %v719_v52, %v603_v12 }
  0xf7   : > { %v2716_v23 = vsub.s32 %v1081_v11, %v1083_v10 }
  0xf8   : > { %v611_v13 = vpop.permute.xlu0 %610 }
  0xf9   : > { %v617_v15 = vpop.permute.xlu1 %616  ;;  %v745_v36 = vsel %vm737_vm11, %v728_v33, %v611_v13 }
  0xfa   : > { %v751_v45 = vsel %vm737_vm11, %v734_v42, %v617_v15 }
  0xfc   : > { %v625_v16 = vpop.permute.xlu0 %624 }
  0xfd   : > { %v619_v20 = vpop.permute.xlu1 %618  ;;  %v760_v28 = vsel %vm754_vm12, %v743_v39, %v625_v16 }
  0xfe   : > { %v753_v34 = vsel %vm737_vm11, %v736_v53, %v619_v20 }
 0x100   : > { %v627_v22 = vpop.permute.xlu0 %626 }
 0x101   : > { %v633_v26 = vpop.permute.xlu1 %632  ;;  %v762_v2 = vsel %vm754_vm12, %v745_v36, %v627_v22 }
 0x102   : > { %v768_v49 = vsel %vm754_vm12, %v751_v45, %v633_v26 }
 0x104   : > { %v641_v51 = vpop.permute.xlu0 %640 }
 0x105   : > { %v777_v30 = vsel %vm771_vm13, %v760_v28, %v641_v51  ;;  %v635_v38 = vpop.permute.xlu1 %634 }
 0x106   : > { %2101 = vmatprep.mubr.msk.bf16.mxu0 %vm826_vm14, %v777_v30  ;;  %v770_v54 = vsel %vm754_vm12, %v753_v34, %v635_v38 }
 0x108   : > { %v643_v47 = vpop.permute.xlu0 %642 }
 0x109   : > { %v779_v43 = vsel %vm771_vm13, %v762_v2, %v643_v47  ;;  %v649_v37 = vpop.permute.xlu1 %648 }
 0x10a   : > { %2102 = vmatmul.mubr.msk.bf16.gmra.mxu0 %vm826_vm14, %v779_v43  ;;  %v785_v27 = vsel %vm771_vm13, %v768_v49, %v649_v37 }
 0x10b   : > { %2109 = vmatprep.mubr.msk.bf16.mxu1 %vm826_vm14, %v785_v27 }
 0x10d   : > { %v651_v55 = vpop.permute.xlu1 %650 }
 0x10e   : > { %v787_v56 = vsel %vm771_vm13, %v770_v54, %v651_v55 }
 0x10f   : > { %2110 = vmatmul.mubr.msk.bf16.gmra.mxu1 %vm826_vm14, %v787_v56 }
 0x18e   : > { %v2099_v32 = vpop.f32.mrf.mxu0 }
 0x18f   : > { %v893_v58 = vadd.f32 %v2099_v32, %v2695_v50 }
 0x190   : > { %v884_v61 = vpop.f32.mrf.mxu0 }
 0x191   : > { %v949_v59 = vmax.f32 %v893_v58, 0.0  ;;  %v885_v60 = vadd.f32 %v2695_v50, %v884_v61 }
 0x192   : > { %v2100_v62 = vpop.f32.mrf.mxu0 }
 0x193   : > { %v2062_v0 = vpack.c.bf16 %v949_v59, %v949_v59  ;;  %v947_v1 = vmax.f32 %v885_v60, 0.0  ;;  %v896_v6 = vadd.f32 %v2100_v62, %v2695_v50  ;;  %v2107_v5 = vpop.f32.mrf.mxu1 }
 0x194   : > { %v887_v4 = vpop.f32.mrf.mxu0  ;;  %v925_v12 = vadd.f32 %v2107_v5, %v2695_v50 }
 0x195   : > { %1030 = vst.msk [vmem:[%s2704_s10 + $0x8] sm:$0xf] %vm1027_vm15, %v2062_v0  ;;  %v2060_v7 = vpack.c.bf16 %v947_v1, %v947_v1  ;;  %v950_v8 = vmax.f32 %v896_v6, 0.0  ;;  %v888_v9 = vadd.f32 %v2695_v50, %v887_v4  ;;  %v916_v17 = vpop.f32.mrf.mxu1 }
 0x196   : > { %v957_v19 = vmax.f32 %v925_v12, 0.0  ;;  %v917_v20 = vadd.f32 %v2695_v50, %v916_v17 }
 0x197   : > { %1028 = vst.msk [vmem:[%s2704_s10] sm:$0xf] %vm1027_vm15, %v2060_v7  ;;  %v964_v13 = vpack.c.bf16 %v950_v8, %v949_v59  ;;  %v2063_v15 = vpack.c.bf16 %v950_v8, %v950_v8  ;;  %v948_v16 = vmax.f32 %v888_v9, 0.0  ;;  %v2108_v22 = vpop.f32.mrf.mxu1 }
 0x198   : > { %v2070_v24 = vpack.c.bf16 %v957_v19, %v957_v19  ;;  %v955_v25 = vmax.f32 %v917_v20, 0.0  ;;  %v928_v39 = vadd.f32 %v2108_v22, %v2695_v50 }
 0x199   : > { %1031 = vst.msk [vmem:[%s2704_s10 + $0xc] sm:$0xf] %vm1027_vm15, %v2063_v15  ;;  %v963_v3 = vpack.c.bf16 %v948_v16, %v947_v1  ;;  %v2061_v21 = vpack.c.bf16 %v948_v16, %v948_v16  ;;  %v1050_v26 = vsel %vm1044_vm0, %v964_v13, 4286644096  ;;  %v919_v28 = vpop.f32.mrf.mxu1 }
 0x19a   : > { %1038 = vst.msk [vmem:[%s2704_s10 + $0x28] sm:$0xf] %vm1027_vm15, %v2070_v24  ;;  %v2068_v57 = vpack.c.bf16 %v955_v25, %v955_v25  ;;  %v958_v29 = vmax.f32 %v928_v39, 0.0  ;;  %v920_v30 = vadd.f32 %v2695_v50, %v919_v28 }
 0x19b   : > { %1029 = vst.msk [vmem:[%s2704_s10 + $0x4] sm:$0xf] %vm1027_vm15, %v2061_v21  ;;  %v1047_v48 = vsel %vm1044_vm0, %v963_v3, 4286644096 }
 0x19c   : > { %v1052_v51 = vmax.bf16 %v1050_v26, %v1047_v48  ;;  %1036 = vst.msk [vmem:[%s2704_s10 + $0x20] sm:$0xf] %vm1027_vm15, %v2068_v57  ;;  %v2071_v35 = vpack.c.bf16 %v958_v29, %v958_v29  ;;  %v968_v36 = vpack.c.bf16 %v958_v29, %v957_v19  ;;  %v956_v38 = vmax.f32 %v920_v30, 0.0 }
 0x19e   : > { %v1078_v31 = vcombine.high %v1052_v51, %v1052_v51  ;;  %v1085_v33 = vrot.slane %v1052_v51, %v2716_v23  ;;  %1039 = vst.msk [vmem:[%s2704_s10 + $0x2c] sm:$0xf] %vm1027_vm15, %v2071_v35  ;;  %v967_v41 = vpack.c.bf16 %v956_v38, %v955_v25  ;;  %v2069_v42 = vpack.c.bf16 %v956_v38, %v956_v38 }
 0x19f   : > { %v2737_v37 = vsel %vm1044_vm0, %v968_v36, 4286644096 }
 0x1a0   : > { %v1092_v40 = vrot.slane %v1078_v31, %v2716_v23  ;;  %v1093_v2 = vcombine.high %v1085_v33, %v1085_v33  ;;  %v1101_v47 = vrot.slane %v1085_v33, %v2716_v23  ;;  %1037 = vst.msk [vmem:[%s2704_s10 + $0x24] sm:$0xf] %vm1027_vm15, %v2069_v42  ;;  %v2742_v52 = vsel %vm1044_vm0, %v967_v41, 4286644096 }
 0x1a2   : > { %v1094_v43 = vcombine.high %v1092_v40, %v1092_v40  ;;  %v1108_v44 = vrot.slane %v1092_v40, %v2716_v23  ;;  %v1115_v45 = vrot.slane %v1093_v2, %v2716_v23  ;;  %v1123_v46 = vcombine.high %v1101_v47, %v1101_v47 }
 0x1a3   : > { %v1276_v49 = vsel %vm1274_vm1, %v1101_v47, 4286644096 }
 0x1a4   : > { %v1122_v27 = vrot.slane %v1094_v43, %v2716_v23  ;;  %v1124_v53 = vcombine.high %v1108_v44, %v1108_v44  ;;  %v1125_v34 = vcombine.high %v1115_v45, %v1115_v45  ;;  %v1278_v54 = vunpack.i.l.bf16 %v1276_v49 }
 0x1a5   : > { %v1279_v55 = vunpack.i.h.bf16 %v1276_v49  ;;  %v1289_v56 = vsel %vm1274_vm1, %v1115_v45, 4286644096  ;;  %v1302_v32 = vsel %vm1274_vm1, %v1123_v46, 4286644096  ;;  %v1328_v58 = vsel %vm1274_vm1, %v1108_v44, 4286644096 }
 0x1a6   : > { %v1126_v61 = vcombine.high %v1122_v27, %v1122_v27  ;;  %v1291_v59 = vunpack.i.l.bf16 %v1289_v56  ;;  %v1292_v60 = vunpack.i.h.bf16 %v1289_v56  ;;  %v1304_v62 = vunpack.i.l.bf16 %v1302_v32 }
 0x1a7   : > { %v1280_v14 = vmax.f32 %v1278_v54, %v1279_v55  ;;  %v1305_v63 = vunpack.i.h.bf16 %v1302_v32  ;;  %v1315_v18 = vsel %vm1274_vm1, %v1125_v34, 4286644096  ;;  %v1330_v0 = vunpack.i.l.bf16 %v1328_v58 }
 0x1a8   : > { %v1293_v1 = vmax.f32 %v1291_v59, %v1292_v60  ;;  %v1317_v6 = vunpack.i.l.bf16 %v1315_v18  ;;  %v1318_v4 = vunpack.i.h.bf16 %v1315_v18  ;;  %v1331_v7 = vunpack.i.h.bf16 %v1328_v58 }
 0x1a9   : > { %v1281_v8 = vrot.slane %v1280_v14, 4  ;;  %v1306_v9 = vmax.f32 %v1304_v62, %v1305_v63  ;;  %v1341_v5 = vsel %vm1274_vm1, %v1122_v27, 4286644096  ;;  %v1354_v11 = vsel %vm1274_vm1, %v1124_v53, 4286644096 }
 0x1aa   : > { %v1294_v10 = vrot.slane %v1293_v1, 4  ;;  %v1319_v12 = vmax.f32 %v1317_v6, %v1318_v4  ;;  %v1332_v13 = vmax.f32 %v1330_v0, %v1331_v7  ;;  %v1343_v15 = vunpack.i.l.bf16 %v1341_v5 }
 0x1ab   : > { %v1282_v16 = vmax.f32 %v1280_v14, %v1281_v8  ;;  %v1307_v17 = vrot.slane %v1306_v9, 4  ;;  %v1344_v19 = vunpack.i.h.bf16 %v1341_v5  ;;  %v1356_v20 = vunpack.i.l.bf16 %v1354_v11 }
 0x1ac   : > { %v1295_v3 = vmax.f32 %v1293_v1, %v1294_v10  ;;  %v1320_v21 = vrot.slane %v1319_v12, 4  ;;  %v1333_v22 = vrot.slane %v1332_v13, 4  ;;  %v1357_v24 = vunpack.i.h.bf16 %v1354_v11 }
 0x1ad   : > { %v1283_v25 = vrot.slane %v1282_v16, 2  ;;  %v1308_v39 = vmax.f32 %v1306_v9, %v1307_v17  ;;  %v1345_v26 = vmax.f32 %v1343_v15, %v1344_v19  ;;  %v1367_v48 = vsel %vm1274_vm1, %v1126_v61, 4286644096 }
 0x1ae   : > { %v1296_v28 = vrot.slane %v1295_v3, 2  ;;  %v1321_v51 = vmax.f32 %v1319_v12, %v1320_v21  ;;  %v1334_v57 = vmax.f32 %v1332_v13, %v1333_v22  ;;  %v1358_v29 = vmax.f32 %v1356_v20, %v1357_v24 }
 0x1af   : > { %v1284_v30 = vmax.f32 %v1282_v16, %v1283_v25  ;;  %v1309_v31 = vrot.slane %v1308_v39, 2  ;;  %v1346_v33 = vrot.slane %v1345_v26, 4  ;;  %v1369_v35 = vunpack.i.l.bf16 %v1367_v48 }
 0x1b0   : > { %v1297_v36 = vmax.f32 %v1295_v3, %v1296_v28  ;;  %v1322_v38 = vrot.slane %v1321_v51, 2  ;;  %v1335_v40 = vrot.slane %v1334_v57, 2  ;;  %v1359_v2 = vrot.slane %v1358_v29, 4 }
 0x1b1   : > { %v1285_v47 = vrot.slane %v1284_v30, 1  ;;  %v1310_v41 = vmax.f32 %v1308_v39, %v1309_v31  ;;  %v1347_v42 = vmax.f32 %v1345_v26, %v1346_v33  ;;  %v1370_v43 = vunpack.i.h.bf16 %v1367_v48 }
 0x1b2   : > { %v1298_v44 = vrot.slane %v1297_v36, 1  ;;  %v1323_v45 = vmax.f32 %v1321_v51, %v1322_v38  ;;  %v1336_v46 = vmax.f32 %v1334_v57, %v1335_v40  ;;  %v1360_v49 = vmax.f32 %v1358_v29, %v1359_v2 }
 0x1b3   : > { %v1286_v27 = vmax.f32 %v1284_v30, %v1285_v47  ;;  %v1311_v53 = vrot.slane %v1310_v41, 1  ;;  %v1348_v34 = vrot.slane %v1347_v42, 2  ;;  %v1371_v54 = vmax.f32 %v1369_v35, %v1370_v43 }
 0x1b4   : > { %v1299_v55 = vmax.f32 %v1297_v36, %v1298_v44  ;;  %v1324_v56 = vrot.slane %v1323_v45, 1  ;;  %v1337_v32 = vrot.slane %v1336_v46, 1  ;;  %v1361_v58 = vrot.slane %v1360_v49, 2 }
 0x1b5   : > { %v1287_v61 = vpack.i.bf16 %v1286_v27, %v1286_v27  ;;  %v1312_v59 = vmax.f32 %v1310_v41, %v1311_v53  ;;  %v1349_v60 = vmax.f32 %v1347_v42, %v1348_v34  ;;  %v1372_v62 = vrot.slane %v1371_v54, 4 }
 0x1b6   : > { %v1300_v14 = vpack.i.bf16 %v1299_v55, %v1299_v55  ;;  %v1325_v63 = vmax.f32 %v1323_v45, %v1324_v56  ;;  %v1338_v18 = vmax.f32 %v1336_v46, %v1337_v32  ;;  %v1362_v0 = vmax.f32 %v1360_v49, %v1361_v58 }
 0x1b7   : > { %v1313_v1 = vpack.i.bf16 %v1312_v59, %v1312_v59  ;;  %v1350_v6 = vrot.slane %v1349_v60, 1  ;;  %v1373_v4 = vmax.f32 %v1371_v54, %v1372_v62  ;;  %v2021_v7 = vcombine.low %v1287_v61, %v1287_v61 }
 0x1b8   : > { %v1326_v8 = vpack.i.bf16 %v1325_v63, %v1325_v63  ;;  %v1339_v9 = vpack.i.bf16 %v1338_v18, %v1338_v18  ;;  %v1363_v5 = vrot.slane %v1362_v0, 1  ;;  %v2022_v11 = vcombine.low %v1300_v14, %v1300_v14 }
 0x1b9   : > { %v1351_v10 = vmax.f32 %v1349_v60, %v1350_v6  ;;  %v1374_v12 = vrot.slane %v1373_v4, 2  ;;  %v2023_v13 = vcombine.low %v1313_v1, %v1313_v1  ;;  %v1787_v15 = vunpack.c.l.b16 %v2021_v7 }
 0x1ba   : > { %v1364_v16 = vmax.f32 %v1362_v0, %v1363_v5  ;;  %v2024_v17 = vcombine.low %v1326_v8, %v1326_v8  ;;  %v2025_v19 = vcombine.low %v1339_v9, %v1339_v9  ;;  %v1788_v20 = vunpack.c.l.b16 %v2022_v11 }
 0x1bb   : > { %v1352_v3 = vpack.i.bf16 %v1351_v10, %v1351_v10  ;;  %v1375_v21 = vmax.f32 %v1373_v4, %v1374_v12  ;;  %v1789_v22 = vunpack.c.l.b16 %v2023_v13  ;;  %v1066_v24 = vmax.bf16 %v2737_v37, %v2742_v52 }
 0x1bc   : > { %v1365_v25 = vpack.i.bf16 %v1364_v16, %v1364_v16  ;;  %v1790_v39 = vunpack.c.l.b16 %v2024_v17  ;;  %v1791_v26 = vunpack.c.l.b16 %v2025_v19  ;;  %v1820_v48 = vsel %vm1819_vm2, %v1788_v20, %v1787_v15 }
 0x1bd   : > { %v1376_v28 = vrot.slane %v1375_v21, 1  ;;  %v2026_v51 = vcombine.low %v1352_v3, %v1352_v3  ;;  %v1822_v57 = vsel %vm1821_vm3, %v1789_v22, %v1820_v48  ;;  %v1176_v29 = vcombine.high %v1066_v24, %v1066_v24 }
 0x1be   : > { %v2027_v30 = vcombine.low %v1365_v25, %v1365_v25  ;;  %v1824_v31 = vsel %vm1823_vm4, %v1790_v39, %v1822_v57  ;;  %v1183_v33 = vrot.slane %v1066_v24, %v2716_v23 }
 0x1bf   : > { %v1377_v35 = vmax.f32 %v1375_v21, %v1376_v28  ;;  %v1792_v36 = vunpack.c.l.b16 %v2026_v51  ;;  %v1826_v37 = vsel %vm1825_vm5, %v1791_v26, %v1824_v31  ;;  %v1190_v52 = vrot.slane %v1176_v29, %v2716_v23 }
 0x1c0   : > { %v1793_v38 = vunpack.c.l.b16 %v2027_v30  ;;  %v1191_v40 = vcombine.high %v1183_v33, %v1183_v33  ;;  %v1199_v2 = vrot.slane %v1183_v33, %v2716_v23 }
 0x1c1   : > { %v2761_v47 = vpack.i.bf16 %v1377_v35, %v1377_v35  ;;  %v1192_v41 = vcombine.high %v1190_v52, %v1190_v52  ;;  %v1206_v42 = vrot.slane %v1190_v52, %v2716_v23  ;;  %v1828_v43 = vsel %vm1827_vm6, %v1792_v36, %v1826_v37 }
 0x1c2   : > { %v1213_v44 = vrot.slane %v1191_v40, %v2716_v23  ;;  %v1221_v45 = vcombine.high %v1199_v2, %v1199_v2  ;;  %v1484_v46 = vsel %vm1274_vm1, %v1199_v2, 4286644096  ;;  %v2771_v34 = vsel %vm1829_vm7, %v1793_v38, %v1828_v43 }
 0x1c3   : > { %v2028_v49 = vcombine.low %v2761_v47, %v2761_v47  ;;  %v1220_v27 = vrot.slane %v1192_v41, %v2716_v23  ;;  %v1486_v53 = vunpack.i.l.bf16 %v1484_v46  ;;  %v1487_v55 = vunpack.i.h.bf16 %v1484_v46 }
 0x1c4   : > { %v1223_v54 = vcombine.high %v1213_v44, %v1213_v44  ;;  %v1497_v56 = vsel %vm1274_vm1, %v1213_v44, 4286644096  ;;  %v1510_v32 = vsel %vm1274_vm1, %v1221_v45, 4286644096  ;;  %v1222_v58 = vcombine.high %v1206_v42, %v1206_v42 }
 0x1c5   : > { %v1224_v61 = vcombine.high %v1220_v27, %v1220_v27  ;;  %v1499_v59 = vunpack.i.l.bf16 %v1497_v56  ;;  %v1500_v60 = vunpack.i.h.bf16 %v1497_v56  ;;  %v1488_v62 = vmax.f32 %v1486_v53, %v1487_v55 }
 0x1c6   : > { %v1512_v14 = vunpack.i.l.bf16 %v1510_v32  ;;  %v1513_v63 = vunpack.i.h.bf16 %v1510_v32  ;;  %v1523_v18 = vsel %vm1274_vm1, %v1223_v54, 4286644096  ;;  %v1536_v4 = vsel %vm1274_vm1, %v1206_v42, 4286644096 }
 0x1c7   : > { %v1501_v0 = vmax.f32 %v1499_v59, %v1500_v60  ;;  %v1525_v1 = vunpack.i.l.bf16 %v1523_v18  ;;  %v1526_v6 = vunpack.i.h.bf16 %v1523_v18  ;;  %v1489_v7 = vrot.slane %v1488_v62, 4 }
 0x1c8   : > { %v1514_v8 = vmax.f32 %v1512_v14, %v1513_v63  ;;  %v1538_v9 = vunpack.i.l.bf16 %v1536_v4  ;;  %v1539_v5 = vunpack.i.h.bf16 %v1536_v4  ;;  %v1549_v12 = vsel %vm1274_vm1, %v1220_v27, 4286644096 }
 0x1c9   : > { %v1502_v11 = vrot.slane %v1501_v0, 4  ;;  %v1527_v10 = vmax.f32 %v1525_v1, %v1526_v6  ;;  %v1562_v13 = vsel %vm1274_vm1, %v1222_v58, 4286644096  ;;  %v1490_v15 = vmax.f32 %v1488_v62, %v1489_v7 }
 0x1ca   : > { %v1515_v16 = vrot.slane %v1514_v8, 4  ;;  %v1540_v17 = vmax.f32 %v1538_v9, %v1539_v5  ;;  %v1551_v19 = vunpack.i.l.bf16 %v1549_v12  ;;  %v1552_v21 = vunpack.i.h.bf16 %v1549_v12  ;;  %v2103_v42 = vpop.f32.mrf.mxu0 }
 0x1cb   : > { %v1503_v20 = vmax.f32 %v1501_v0, %v1502_v11  ;;  %v1528_v3 = vrot.slane %v1527_v10, 4  ;;  %v1564_v22 = vunpack.i.l.bf16 %v1562_v13  ;;  %v1491_v24 = vrot.slane %v1490_v15, 2 }
 0x1cc   : > { %v1516_v25 = vmax.f32 %v1514_v8, %v1515_v16  ;;  %v1541_v39 = vrot.slane %v1540_v17, 4  ;;  %v1565_v26 = vunpack.i.h.bf16 %v1562_v13  ;;  %v1553_v51 = vmax.f32 %v1551_v19, %v1552_v21  ;;  %v900_v63 = vpop.f32.mrf.mxu0 }
 0x1cd   : > { %v1504_v48 = vrot.slane %v1503_v20, 2  ;;  %v1529_v28 = vmax.f32 %v1527_v10, %v1528_v3  ;;  %v1575_v57 = vsel %vm1274_vm1, %v1224_v61, 4286644096  ;;  %v1492_v29 = vmax.f32 %v1490_v15, %v1491_v24 }
 0x1ce   : > { %v1517_v30 = vrot.slane %v1516_v25, 2  ;;  %v1542_v31 = vmax.f32 %v1540_v17, %v1541_v39  ;;  %v1566_v33 = vmax.f32 %v1564_v22, %v1565_v26  ;;  %v1554_v37 = vrot.slane %v1553_v51, 4 }
 0x1cf   : > { %v1505_v35 = vmax.f32 %v1503_v20, %v1504_v48  ;;  %v1530_v36 = vrot.slane %v1529_v28, 2  ;;  %v1577_v52 = vunpack.i.l.bf16 %v1575_v57  ;;  %v1493_v38 = vrot.slane %v1492_v29, 1  ;;  %v2111_v4 = vpop.f32.mrf.mxu1  ;;  %v2104_v20 = vpop.f32.mrf.mxu0 }
 0x1d0   : > { %v1518_v40 = vmax.f32 %v1516_v25, %v1517_v30  ;;  %v1543_v2 = vrot.slane %v1542_v31, 2  ;;  %v1567_v41 = vrot.slane %v1566_v33, 4  ;;  %v1555_v45 = vmax.f32 %v1553_v51, %v1554_v37 }
 0x1d1   : > { %v1506_v43 = vrot.slane %v1505_v35, 1  ;;  %v1531_v44 = vmax.f32 %v1529_v28, %v1530_v36  ;;  %v1578_v46 = vunpack.i.h.bf16 %v1575_v57  ;;  %v1494_v27 = vmax.f32 %v1492_v29, %v1493_v38  ;;  %v932_v25 = vpop.f32.mrf.mxu1  ;;  %v903_v37 = vpop.f32.mrf.mxu0 }
 0x1d2   : > { %v1519_v53 = vrot.slane %v1518_v40, 1  ;;  %v1544_v54 = vmax.f32 %v1542_v31, %v1543_v2  ;;  %v1568_v55 = vmax.f32 %v1566_v33, %v1567_v41  ;;  %v1556_v58 = vrot.slane %v1555_v45, 2 }
 0x1d3   : > { %v1507_v56 = vmax.f32 %v1505_v35, %v1506_v43  ;;  %v1532_v32 = vrot.slane %v1531_v44, 1  ;;  %v1579_v61 = vmax.f32 %v1577_v52, %v1578_v46  ;;  %v1495_v59 = vpack.i.bf16 %v1494_v27, %v1494_v27  ;;  %v2112_v41 = vpop.f32.mrf.mxu1 }
 0x1d4   : > { %v1520_v60 = vmax.f32 %v1518_v40, %v1519_v53  ;;  %v1545_v62 = vrot.slane %v1544_v54, 1  ;;  %v1569_v14 = vrot.slane %v1568_v55, 2  ;;  %v1557_v1 = vmax.f32 %v1555_v45, %v1556_v58 }
 0x1d5   : > { %v1508_v18 = vpack.i.bf16 %v1507_v56, %v1507_v56  ;;  %v1533_v0 = vmax.f32 %v1531_v44, %v1532_v32  ;;  %v1580_v6 = vrot.slane %v1579_v61, 4  ;;  %v2037_v5 = vcombine.low %v1495_v59, %v1495_v59 }
 0x1d6   : > { %v1521_v7 = vpack.i.bf16 %v1520_v60, %v1520_v60  ;;  %v1546_v8 = vmax.f32 %v1544_v54, %v1545_v62  ;;  %v1570_v9 = vmax.f32 %v1568_v55, %v1569_v14  ;;  %v1558_v10 = vrot.slane %v1557_v1, 1  ;;  %v935_v60 = vpop.f32.mrf.mxu1 }
 0x1d7   : > { %v1534_v11 = vpack.i.bf16 %v1533_v0, %v1533_v0  ;;  %v1581_v12 = vmax.f32 %v1579_v61, %v1580_v6  ;;  %v2038_v13 = vcombine.low %v1508_v18, %v1508_v18  ;;  %v1803_v19 = vunpack.c.l.b16 %v2037_v5 }
 0x1d8   : > { %v1547_v15 = vpack.i.bf16 %v1546_v8, %v1546_v8  ;;  %v1571_v16 = vrot.slane %v1570_v9, 1  ;;  %v2039_v17 = vcombine.low %v1521_v7, %v1521_v7  ;;  %v1559_v3 = vmax.f32 %v1557_v1, %v1558_v10 }
 0x1d9   : > { %v1582_v21 = vrot.slane %v1581_v12, 2  ;;  %v2040_v22 = vcombine.low %v1534_v11, %v1534_v11  ;;  %v1804_v24 = vunpack.c.l.b16 %v2038_v13  ;;  %v909_v28 = vadd.f32 %v2103_v42, %v2695_v50 }
 0x1da   : > { %v1572_v39 = vmax.f32 %v1570_v9, %v1571_v16  ;;  %v2041_v26 = vcombine.low %v1547_v15, %v1547_v15  ;;  %v1805_v48 = vunpack.c.l.b16 %v2039_v17  ;;  %v1560_v51 = vpack.i.bf16 %v1559_v3, %v1559_v3 }
 0x1db   : > { %v1583_v57 = vmax.f32 %v1581_v12, %v1582_v21  ;;  %v1806_v29 = vunpack.c.l.b16 %v2040_v22  ;;  %v1840_v30 = vsel %vm1819_vm2, %v1804_v24, %v1803_v19  ;;  %v953_v36 = vmax.f32 %v909_v28, 0.0 }
 0x1dc   : > { %v1573_v31 = vpack.i.bf16 %v1572_v39, %v1572_v39  ;;  %v1807_v33 = vunpack.c.l.b16 %v2041_v26  ;;  %v1841_v35 = vsel %vm1821_vm3, %v1805_v48, %v1840_v30  ;;  %v2042_v38 = vcombine.low %v1560_v51, %v1560_v51 }
 0x1dd   : > { %v1584_v52 = vrot.slane %v1583_v57, 1  ;;  %v1842_v40 = vsel %vm1823_vm4, %v1806_v29, %v1841_v35  ;;  %v901_v2 = vadd.f32 %v2695_v50, %v900_v63  ;;  %v1794_v42 = vunpack.c.l.b16 %v2028_v49 }
 0x1de   : > { %v2043_v43 = vcombine.low %v1573_v31, %v1573_v31  ;;  %v2066_v44 = vpack.c.bf16 %v953_v36, %v953_v36  ;;  %v912_v45 = vadd.f32 %v2104_v20, %v2695_v50  ;;  %v1843_v27 = vsel %vm1825_vm5, %v1807_v33, %v1842_v40 }
 0x1df   : > { %v1585_v46 = vmax.f32 %v1583_v57, %v1584_v52  ;;  %v951_v53 = vmax.f32 %v901_v2, 0.0  ;;  %v904_v54 = vadd.f32 %v2695_v50, %v903_v37  ;;  %v1808_v55 = vunpack.c.l.b16 %v2042_v38 }
 0x1e0   : > { %1034 = vst.msk [vmem:[%s2704_s10 + $0x18] sm:$0xf] %vm1027_vm15, %v2066_v44  ;;  %v954_v56 = vmax.f32 %v912_v45, 0.0  ;;  %v941_v32 = vadd.f32 %v2111_v4, %v2695_v50  ;;  %v933_v47 = vadd.f32 %v2695_v50, %v932_v25  ;;  %v944_v59 = vadd.f32 %v2112_v41, %v2695_v50 }
 0x1e1   : > { %v1586_v49 = vpack.i.bf16 %v1585_v46, %v1585_v46  ;;  %v2064_v58 = vpack.c.bf16 %v951_v53, %v951_v53  ;;  %v952_v61 = vmax.f32 %v904_v54, 0.0  ;;  %v1809_v7 = vunpack.c.l.b16 %v2043_v43 }
 0x1e2   : > { %v966_v62 = vpack.c.bf16 %v954_v56, %v953_v36  ;;  %v2067_v14 = vpack.c.bf16 %v954_v56, %v954_v56  ;;  %v961_v63 = vmax.f32 %v941_v32, 0.0  ;;  %v959_v18 = vmax.f32 %v933_v47, 0.0 }
 0x1e3   : > { %v2044_v0 = vcombine.low %v1586_v49, %v1586_v49  ;;  %1032 = vst.msk [vmem:[%s2704_s10 + $0x10] sm:$0xf] %vm1027_vm15, %v2064_v58  ;;  %v965_v1 = vpack.c.bf16 %v952_v61, %v951_v53  ;;  %v2065_v6 = vpack.c.bf16 %v952_v61, %v952_v61  ;;  %v962_v4 = vmax.f32 %v944_v59, 0.0 }
 0x1e4   : > { %1035 = vst.msk [vmem:[%s2704_s10 + $0x1c] sm:$0xf] %vm1027_vm15, %v2067_v14  ;;  %v2074_v8 = vpack.c.bf16 %v961_v63, %v961_v63  ;;  %v2072_v9 = vpack.c.bf16 %v959_v18, %v959_v18  ;;  %v936_v5 = vadd.f32 %v2695_v50, %v935_v60  ;;  %v1057_v11 = vsel %vm1044_vm0, %v966_v62, 4286644096 }
 0x1e5   : > { %1033 = vst.msk [vmem:[%s2704_s10 + $0x14] sm:$0xf] %vm1027_vm15, %v2065_v6  ;;  %v1054_v10 = vsel %vm1044_vm0, %v965_v1, 4286644096  ;;  %v970_v12 = vpack.c.bf16 %v962_v4, %v961_v63  ;;  %v2075_v13 = vpack.c.bf16 %v962_v4, %v962_v4  ;;  %v1832_v17 = vsel %vm1831_vm8, %v1794_v42, %v2771_v34 }
 0x1e6   : > { %v1059_v15 = vmax.bf16 %v1057_v11, %v1054_v10  ;;  %1042 = vst.msk [vmem:[%s2704_s10 + $0x38] sm:$0xf] %vm1027_vm15, %v2074_v8  ;;  %1040 = vst.msk [vmem:[%s2704_s10 + $0x30] sm:$0xf] %vm1027_vm15, %v2072_v9  ;;  %v960_v16 = vmax.f32 %v936_v5, 0.0  ;;  %v1844_v19 = vsel %vm1827_vm6, %v1808_v55, %v1843_v27  ;;  %v1810_v50 = vunpack.c.l.b16 %v2044_v0 }
 0x1e7   : > { %1043 = vst.msk [vmem:[%s2704_s10 + $0x3c] sm:$0xf] %vm1027_vm15, %v2075_v13  ;;  %v1845_v20 = vsel %vm1829_vm7, %v1809_v7, %v1844_v19  ;;  %v1854_v3 = vpack.c.b16 %v1832_v17, %v1832_v17  ;;  %v1071_v39 = vsel %vm1044_vm0, %v970_v12, 4286644096 }
 0x1e8   : > { %v1127_v21 = vcombine.high %v1059_v15, %v1059_v15  ;;  %v1134_v22 = vrot.slane %v1059_v15, %v2716_v23  ;;  %v969_v24 = vpack.c.bf16 %v960_v16, %v959_v18  ;;  %v2073_v25 = vpack.c.bf16 %v960_v16, %v960_v16 }
 0x1e9   : > { %v1846_v26 = vsel %vm1831_vm8, %v1810_v50, %v1845_v20  ;;  %1862 = vst.msk [vmem:[%s2821_s12] sm:$0xf] %vm1027_vm15, %v1854_v3 }
 0x1ea   : > { %v1141_v34 = vrot.slane %v1127_v21, %v2716_v23  ;;  %v1142_v48 = vcombine.high %v1134_v22, %v1134_v22  ;;  %v1150_v28 = vrot.slane %v1134_v22, %v2716_v23  ;;  %1041 = vst.msk [vmem:[%s2704_s10 + $0x34] sm:$0xf] %vm1027_vm15, %v2073_v25  ;;  %v1068_v51 = vsel %vm1044_vm0, %v969_v24, 4286644096 }
 0x1eb   : > { %v2830_v57 = vmax.bf16 %v1071_v39, %v1068_v51  ;;  %v1856_v29 = vpack.c.b16 %v1846_v26, %v1846_v26 }
 0x1ec   : > { %v1143_v30 = vcombine.high %v1141_v34, %v1141_v34  ;;  %v1157_v31 = vrot.slane %v1141_v34, %v2716_v23  ;;  %v1164_v33 = vrot.slane %v1142_v48, %v2716_v23  ;;  %v1172_v35 = vcombine.high %v1150_v28, %v1150_v28 }
 0x1ed   : > { %v1380_v36 = vsel %vm1274_vm1, %v1150_v28, 4286644096  ;;  %v1225_v37 = vcombine.high %v2830_v57, %v2830_v57  ;;  %v2839_v52 = vrot.slane %v2830_v57, %v2716_v23  ;;  %1864 = vst.msk [vmem:[%s2821_s12 + $0x8] sm:$0xf] %vm1027_vm15, %v1856_v29 }
 0x1ee   : > { %v1171_v38 = vrot.slane %v1143_v30, %v2716_v23  ;;  %v1173_v40 = vcombine.high %v1157_v31, %v1157_v31  ;;  %v1174_v2 = vcombine.high %v1164_v33, %v1164_v33  ;;  %v1382_v41 = vunpack.i.l.bf16 %v1380_v36 }
 0x1ef   : > { %v1383_v42 = vunpack.i.h.bf16 %v1380_v36  ;;  %v1393_v43 = vsel %vm1274_vm1, %v1164_v33, 4286644096  ;;  %v1406_v44 = vsel %vm1274_vm1, %v1172_v35, 4286644096  ;;  %v1432_v45 = vsel %vm1274_vm1, %v1157_v31, 4286644096 }
 0x1f0   : > { %v1175_v46 = vcombine.high %v1171_v38, %v1171_v38  ;;  %v1395_v27 = vunpack.i.l.bf16 %v1393_v43  ;;  %v1396_v53 = vunpack.i.h.bf16 %v1393_v43  ;;  %v1408_v54 = vunpack.i.l.bf16 %v1406_v44 }
 0x1f1   : > { %v1384_v55 = vmax.f32 %v1382_v41, %v1383_v42  ;;  %v1409_v56 = vunpack.i.h.bf16 %v1406_v44  ;;  %v1419_v32 = vsel %vm1274_vm1, %v1174_v2, 4286644096  ;;  %v1434_v47 = vunpack.i.l.bf16 %v1432_v45 }
 0x1f2   : > { %v1397_v49 = vmax.f32 %v1395_v27, %v1396_v53  ;;  %v1421_v58 = vunpack.i.l.bf16 %v1419_v32  ;;  %v1422_v61 = vunpack.i.h.bf16 %v1419_v32  ;;  %v1435_v59 = vunpack.i.h.bf16 %v1432_v45 }
 0x1f3   : > { %v1385_v60 = vrot.slane %v1384_v55, 4  ;;  %v1410_v62 = vmax.f32 %v1408_v54, %v1409_v56  ;;  %v1445_v14 = vsel %vm1274_vm1, %v1171_v38, 4286644096  ;;  %v1458_v63 = vsel %vm1274_vm1, %v1173_v40, 4286644096 }
 0x1f4   : > { %v1398_v18 = vrot.slane %v1397_v49, 4  ;;  %v1423_v0 = vmax.f32 %v1421_v58, %v1422_v61  ;;  %v1436_v1 = vmax.f32 %v1434_v47, %v1435_v59  ;;  %v1447_v6 = vunpack.i.l.bf16 %v1445_v14 }
 0x1f5   : > { %v1386_v4 = vmax.f32 %v1384_v55, %v1385_v60  ;;  %v1411_v7 = vrot.slane %v1410_v62, 4  ;;  %v1448_v8 = vunpack.i.h.bf16 %v1445_v14  ;;  %v1460_v9 = vunpack.i.l.bf16 %v1458_v63 }
 0x1f6   : > { %v1399_v5 = vmax.f32 %v1397_v49, %v1398_v18  ;;  %v1424_v11 = vrot.slane %v1423_v0, 4  ;;  %v1437_v10 = vrot.slane %v1436_v1, 4  ;;  %v1461_v12 = vunpack.i.h.bf16 %v1458_v63 }
 0x1f7   : > { %v1387_v13 = vrot.slane %v1386_v4, 2  ;;  %v1412_v15 = vmax.f32 %v1410_v62, %v1411_v7  ;;  %v1449_v16 = vmax.f32 %v1447_v6, %v1448_v8  ;;  %v1471_v17 = vsel %vm1274_vm1, %v1175_v46, 4286644096 }
 0x1f8   : > { %v1400_v19 = vrot.slane %v1399_v5, 2  ;;  %v1425_v50 = vmax.f32 %v1423_v0, %v1424_v11  ;;  %v1438_v20 = vmax.f32 %v1436_v1, %v1437_v10  ;;  %v1462_v3 = vmax.f32 %v1460_v9, %v1461_v12 }
 0x1f9   : > { %v1388_v21 = vmax.f32 %v1386_v4, %v1387_v13  ;;  %v1413_v22 = vrot.slane %v1412_v15, 2  ;;  %v1450_v24 = vrot.slane %v1449_v16, 4  ;;  %v1473_v25 = vunpack.i.l.bf16 %v1471_v17 }
 0x1fa   : > { %v1401_v39 = vmax.f32 %v1399_v5, %v1400_v19  ;;  %v1426_v26 = vrot.slane %v1425_v50, 2  ;;  %v1439_v34 = vrot.slane %v1438_v20, 2  ;;  %v1463_v48 = vrot.slane %v1462_v3, 4 }
 0x1fb   : > { %v1389_v28 = vrot.slane %v1388_v21, 1  ;;  %v1414_v51 = vmax.f32 %v1412_v15, %v1413_v22  ;;  %v1451_v29 = vmax.f32 %v1449_v16, %v1450_v24  ;;  %v1474_v30 = vunpack.i.h.bf16 %v1471_v17 }
 0x1fc   : > { %v1402_v31 = vrot.slane %v1401_v39, 1  ;;  %v1427_v33 = vmax.f32 %v1425_v50, %v1426_v26  ;;  %v1440_v35 = vmax.f32 %v1438_v20, %v1439_v34  ;;  %v1464_v36 = vmax.f32 %v1462_v3, %v1463_v48 }
 0x1fd   : > { %v1390_v38 = vmax.f32 %v1388_v21, %v1389_v28  ;;  %v1415_v40 = vrot.slane %v1414_v51, 1  ;;  %v1452_v2 = vrot.slane %v1451_v29, 2  ;;  %v1475_v41 = vmax.f32 %v1473_v25, %v1474_v30 }
 0x1fe   : > { %v1403_v42 = vmax.f32 %v1401_v39, %v1402_v31  ;;  %v1428_v43 = vrot.slane %v1427_v33, 1  ;;  %v1441_v44 = vrot.slane %v1440_v35, 1  ;;  %v1465_v45 = vrot.slane %v1464_v36, 2 }
 0x1ff   : > { %v1391_v46 = vpack.i.bf16 %v1390_v38, %v1390_v38  ;;  %v1416_v27 = vmax.f32 %v1414_v51, %v1415_v40  ;;  %v1453_v53 = vmax.f32 %v1451_v29, %v1452_v2  ;;  %v1476_v54 = vrot.slane %v1475_v41, 4 }
 0x200   : > { %v1404_v55 = vpack.i.bf16 %v1403_v42, %v1403_v42  ;;  %v1429_v56 = vmax.f32 %v1427_v33, %v1428_v43  ;;  %v1442_v32 = vmax.f32 %v1440_v35, %v1441_v44  ;;  %v1466_v47 = vmax.f32 %v1464_v36, %v1465_v45 }
 0x201   : > { %v1417_v49 = vpack.i.bf16 %v1416_v27, %v1416_v27  ;;  %v1454_v58 = vrot.slane %v1453_v53, 1  ;;  %v1477_v61 = vmax.f32 %v1475_v41, %v1476_v54  ;;  %v2029_v59 = vcombine.low %v1391_v46, %v1391_v46 }
 0x202   : > { %v1430_v60 = vpack.i.bf16 %v1429_v56, %v1429_v56  ;;  %v1443_v62 = vpack.i.bf16 %v1442_v32, %v1442_v32  ;;  %v1467_v14 = vrot.slane %v1466_v47, 1  ;;  %v2030_v63 = vcombine.low %v1404_v55, %v1404_v55 }
 0x203   : > { %v1455_v18 = vmax.f32 %v1453_v53, %v1454_v58  ;;  %v1478_v0 = vrot.slane %v1477_v61, 2  ;;  %v2031_v1 = vcombine.low %v1417_v49, %v1417_v49  ;;  %v1795_v6 = vunpack.c.l.b16 %v2029_v59 }
 0x204   : > { %v1468_v4 = vmax.f32 %v1466_v47, %v1467_v14  ;;  %v2032_v7 = vcombine.low %v1430_v60, %v1430_v60  ;;  %v2033_v8 = vcombine.low %v1443_v62, %v1443_v62  ;;  %v1796_v9 = vunpack.c.l.b16 %v2030_v63 }
 0x205   : > { %v1456_v5 = vpack.i.bf16 %v1455_v18, %v1455_v18  ;;  %v1479_v11 = vmax.f32 %v1477_v61, %v1478_v0  ;;  %v1797_v10 = vunpack.c.l.b16 %v2031_v1  ;;  %v1239_v12 = vrot.slane %v1225_v37, %v2716_v23 }
 0x206   : > { %v1469_v13 = vpack.i.bf16 %v1468_v4, %v1468_v4  ;;  %v1798_v15 = vunpack.c.l.b16 %v2032_v7  ;;  %v1799_v16 = vunpack.c.l.b16 %v2033_v8  ;;  %v1833_v17 = vsel %vm1819_vm2, %v1796_v9, %v1795_v6 }
 0x207   : > { %v1480_v19 = vrot.slane %v1479_v11, 1  ;;  %v2034_v50 = vcombine.low %v1456_v5, %v1456_v5  ;;  %v1834_v20 = vsel %vm1821_vm3, %v1797_v10, %v1833_v17  ;;  %v1240_v3 = vcombine.high %v2839_v52, %v2839_v52 }
 0x208   : > { %v2035_v21 = vcombine.low %v1469_v13, %v1469_v13  ;;  %v1835_v22 = vsel %vm1823_vm4, %v1798_v15, %v1834_v20  ;;  %v1241_v24 = vcombine.high %v1239_v12, %v1239_v12  ;;  %v1248_v57 = vrot.slane %v2839_v52, %v2716_v23 }
 0x209   : > { %v1481_v37 = vmax.f32 %v1479_v11, %v1480_v19  ;;  %v2862_v25 = vunpack.c.l.b16 %v2034_v50  ;;  %v2865_v39 = vsel %vm1825_vm5, %v1799_v16, %v1835_v22  ;;  %v1255_v26 = vrot.slane %v1239_v12, %v2716_v23 }
 0x20a   : > { %v2868_v34 = vunpack.c.l.b16 %v2035_v21  ;;  %v1262_v48 = vrot.slane %v1240_v3, %v2716_v23  ;;  %v1269_v28 = vrot.slane %v1241_v24, %v2716_v23  ;;  %v1270_v51 = vcombine.high %v1248_v57, %v1248_v57 }
 0x20b   : > { %v1482_v29 = vpack.i.bf16 %v1481_v37, %v1481_v37  ;;  %v1271_v30 = vcombine.high %v1255_v26, %v1255_v26  ;;  %v1588_v31 = vsel %vm1274_vm1, %v1248_v57, 4286644096  ;;  %v1640_v52 = vsel %vm1274_vm1, %v1255_v26, 4286644096 }
 0x20c   : > { %v1272_v33 = vcombine.high %v1262_v48, %v1262_v48  ;;  %v1273_v35 = vcombine.high %v1269_v28, %v1269_v28  ;;  %v1590_v36 = vunpack.i.l.bf16 %v1588_v31  ;;  %v1591_v38 = vunpack.i.h.bf16 %v1588_v31 }
 0x20d   : > { %v2036_v40 = vcombine.low %v1482_v29, %v1482_v29  ;;  %v1601_v2 = vsel %vm1274_vm1, %v1262_v48, 4286644096  ;;  %v1614_v41 = vsel %vm1274_vm1, %v1270_v51, 4286644096  ;;  %v1642_v42 = vunpack.i.l.bf16 %v1640_v52 }
 0x20e   : > { %v1592_v43 = vmax.f32 %v1590_v36, %v1591_v38  ;;  %v1603_v44 = vunpack.i.l.bf16 %v1601_v2  ;;  %v1604_v23 = vunpack.i.h.bf16 %v1601_v2  ;;  %v1616_v45 = vunpack.i.l.bf16 %v1614_v41 }
 0x20f   : > { %v2876_v46 = vunpack.c.l.b16 %v2036_v40  ;;  %v1617_v27 = vunpack.i.h.bf16 %v1614_v41  ;;  %v1627_v53 = vsel %vm1274_vm1, %v1272_v33, 4286644096  ;;  %v1643_v54 = vunpack.i.h.bf16 %v1640_v52 }
 0x210   : > { %v1593_v55 = vrot.slane %v1592_v43, 4  ;;  %v1605_v56 = vmax.f32 %v1603_v44, %v1604_v23  ;;  %v1629_v32 = vunpack.i.l.bf16 %v1627_v53  ;;  %v1630_v47 = vunpack.i.h.bf16 %v1627_v53 }
 0x211   : > { %v1618_v49 = vmax.f32 %v1616_v45, %v1617_v27  ;;  %v1644_v58 = vmax.f32 %v1642_v42, %v1643_v54  ;;  %v1653_v61 = vsel %vm1274_vm1, %v1269_v28, 4286644096  ;;  %v1666_v59 = vsel %vm1274_vm1, %v1271_v30, 4286644096 }
 0x212   : > { %v1594_v60 = vmax.f32 %v1592_v43, %v1593_v55  ;;  %v1606_v62 = vrot.slane %v1605_v56, 4  ;;  %v1631_v14 = vmax.f32 %v1629_v32, %v1630_v47  ;;  %v1655_v63 = vunpack.i.l.bf16 %v1653_v61 }
 0x213   : > { %v1619_v18 = vrot.slane %v1618_v49, 4  ;;  %v1645_v0 = vrot.slane %v1644_v58, 4  ;;  %v1656_v1 = vunpack.i.h.bf16 %v1653_v61  ;;  %v1668_v6 = vunpack.i.l.bf16 %v1666_v59 }
 0x214   : > { %v1595_v4 = vrot.slane %v1594_v60, 2  ;;  %v1607_v7 = vmax.f32 %v1605_v56, %v1606_v62  ;;  %v1632_v8 = vrot.slane %v1631_v14, 4  ;;  %v1669_v9 = vunpack.i.h.bf16 %v1666_v59 }
 0x215   : > { %v1620_v5 = vmax.f32 %v1618_v49, %v1619_v18  ;;  %v1646_v11 = vmax.f32 %v1644_v58, %v1645_v0  ;;  %v1657_v10 = vmax.f32 %v1655_v63, %v1656_v1  ;;  %v1679_v12 = vsel %vm1274_vm1, %v1273_v35, 4286644096 }
 0x216   : > { %v1596_v13 = vmax.f32 %v1594_v60, %v1595_v4  ;;  %v1608_v15 = vrot.slane %v1607_v7, 2  ;;  %v1633_v16 = vmax.f32 %v1631_v14, %v1632_v8  ;;  %v1670_v17 = vmax.f32 %v1668_v6, %v1669_v9 }
 0x217   : > { %v1621_v19 = vrot.slane %v1620_v5, 2  ;;  %v1647_v50 = vrot.slane %v1646_v11, 2  ;;  %v1658_v20 = vrot.slane %v1657_v10, 4  ;;  %v1681_v3 = vunpack.i.l.bf16 %v1679_v12 }
 0x218   : > { %v1597_v21 = vrot.slane %v1596_v13, 1  ;;  %v1609_v22 = vmax.f32 %v1607_v7, %v1608_v15  ;;  %v1634_v24 = vrot.slane %v1633_v16, 2  ;;  %v1671_v57 = vrot.slane %v1670_v17, 4 }
 0x219   : > { %v1622_v37 = vmax.f32 %v1620_v5, %v1621_v19  ;;  %v1648_v26 = vmax.f32 %v1646_v11, %v1647_v50  ;;  %v1659_v48 = vmax.f32 %v1657_v10, %v1658_v20  ;;  %v1682_v28 = vunpack.i.h.bf16 %v1679_v12 }
 0x21a   : > { %v1598_v51 = vmax.f32 %v1596_v13, %v1597_v21  ;;  %v1610_v29 = vrot.slane %v1609_v22, 1  ;;  %v1635_v30 = vmax.f32 %v1633_v16, %v1634_v24  ;;  %v1672_v31 = vmax.f32 %v1670_v17, %v1671_v57 }
 0x21b   : > { %v1623_v52 = vrot.slane %v1622_v37, 1  ;;  %v1649_v33 = vrot.slane %v1648_v26, 1  ;;  %v1660_v35 = vrot.slane %v1659_v48, 2  ;;  %v1683_v36 = vmax.f32 %v1681_v3, %v1682_v28 }
 0x21c   : > { %v1599_v38 = vpack.i.bf16 %v1598_v51, %v1598_v51  ;;  %v1611_v40 = vmax.f32 %v1609_v22, %v1610_v29  ;;  %v1636_v2 = vrot.slane %v1635_v30, 1  ;;  %v1673_v41 = vrot.slane %v1672_v31, 2 }
 0x21d   : > { %v1624_v42 = vmax.f32 %v1622_v37, %v1623_v52  ;;  %v1650_v43 = vmax.f32 %v1648_v26, %v1649_v33  ;;  %v1661_v44 = vmax.f32 %v1659_v48, %v1660_v35  ;;  %v1684_v23 = vrot.slane %v1683_v36, 4 }
 0x21e   : > { %v1612_v45 = vpack.i.bf16 %v1611_v40, %v1611_v40  ;;  %v1637_v27 = vmax.f32 %v1635_v30, %v1636_v2  ;;  %v1674_v53 = vmax.f32 %v1672_v31, %v1673_v41  ;;  %v2045_v54 = vcombine.low %v1599_v38, %v1599_v38 }
 0x21f   : > { %v1625_v55 = vpack.i.bf16 %v1624_v42, %v1624_v42  ;;  %v1651_v56 = vpack.i.bf16 %v1650_v43, %v1650_v43  ;;  %v1662_v32 = vrot.slane %v1661_v44, 1  ;;  %v1685_v47 = vmax.f32 %v1683_v36, %v1684_v23 }
 0x220   : > { %v1638_v49 = vpack.i.bf16 %v1637_v27, %v1637_v27  ;;  %v1675_v58 = vrot.slane %v1674_v53, 1  ;;  %v2046_v61 = vcombine.low %v1612_v45, %v1612_v45  ;;  %v1811_v59 = vunpack.c.l.b16 %v2045_v54 }
 0x221   : > { %v1663_v60 = vmax.f32 %v1661_v44, %v1662_v32  ;;  %v1686_v62 = vrot.slane %v1685_v47, 2  ;;  %v2047_v14 = vcombine.low %v1625_v55, %v1625_v55  ;;  %v2049_v63 = vcombine.low %v1651_v56, %v1651_v56 }
 0x222   : > { %v1676_v18 = vmax.f32 %v1674_v53, %v1675_v58  ;;  %v2048_v0 = vcombine.low %v1638_v49, %v1638_v49  ;;  %v1812_v1 = vunpack.c.l.b16 %v2046_v61  ;;  %v1837_v6 = vsel %vm1827_vm6, %v2862_v25, %v2865_v39 }
 0x223   : > { %v1664_v4 = vpack.i.bf16 %v1663_v60, %v1663_v60  ;;  %v1687_v7 = vmax.f32 %v1685_v47, %v1686_v62  ;;  %v1813_v8 = vunpack.c.l.b16 %v2047_v14  ;;  %v1815_v9 = vunpack.c.l.b16 %v2049_v63 }
 0x224   : > { %v1677_v5 = vpack.i.bf16 %v1676_v18, %v1676_v18  ;;  %v1814_v11 = vunpack.c.l.b16 %v2048_v0  ;;  %v1847_v10 = vsel %vm1819_vm2, %v1812_v1, %v1811_v59  ;;  %v1838_v12 = vsel %vm1829_vm7, %v2868_v34, %v1837_v6 }
 0x225   : > { %v1688_v13 = vrot.slane %v1687_v7, 1  ;;  %v2050_v15 = vcombine.low %v1664_v4, %v1664_v4  ;;  %v1848_v16 = vsel %vm1821_vm3, %v1813_v8, %v1847_v10  ;;  %v1839_v25 = vsel %vm1831_vm8, %v2876_v46, %v1838_v12 }
 0x226   : > { %v2051_v39 = vcombine.low %v1677_v5, %v1677_v5  ;;  %v1849_v17 = vsel %vm1823_vm4, %v1814_v11, %v1848_v16  ;;  %v1855_v19 = vpack.c.b16 %v1839_v25, %v1839_v25 }
 0x227   : > { %v1689_v50 = vmax.f32 %v1687_v7, %v1688_v13  ;;  %v1816_v20 = vunpack.c.l.b16 %v2050_v15  ;;  %v1850_v3 = vsel %vm1825_vm5, %v1815_v9, %v1849_v17 }
 0x228   : > { %1863 = vst.msk [vmem:[%s2821_s12 + $0x4] sm:$0xf] %vm1027_vm15, %v1855_v19  ;;  %v1817_v22 = vunpack.c.l.b16 %v2051_v39 }
 0x229   : > { %v1690_v34 = vpack.i.bf16 %v1689_v50, %v1689_v50  ;;  %v1851_v21 = vsel %vm1827_vm6, %v1816_v20, %v1850_v3 }
 0x22a   : > { %v1852_v46 = vsel %vm1829_vm7, %v1817_v22, %v1851_v21 }
 0x22b   : > { %v2052_v24 = vcombine.low %v1690_v34, %v1690_v34 }
 0x22d   : > { %v1818_v57 = vunpack.c.l.b16 %v2052_v24 }
 0x22f   : > { %v1853_v37 = vsel %vm1831_vm8, %v1818_v57, %v1852_v46 }
 0x230   : > { %v1857_v26 = vpack.c.b16 %v1853_v37, %v1853_v37 }
 0x232   : > { %1865 = vst.msk [vmem:[%s2821_s12 + $0xc] sm:$0xf] %vm1027_vm15, %v1857_v26 }
 0x233   : > { %2198 = shalt.err (!%p2195_p3)
}
 0x234   : > { %s2199_s6 = scalar_lea.hbm %s2903_s23, 256  ;;  %s2203_s9 = scalar_lea.hbm %s2955_s4, 512 }
 0x235   : > { %p2200_p4 = scmp.ne.s32.totalorder %s2903_s23, %s2199_s6  ;;  %p2204_p9 = scmp.lt.s32.totalorder %s2903_s23, %s2955_s4 }
 0x236   : > { %p2205_p10 = scmp.lt.s32.totalorder %s2203_s9, %s2199_s6 }
 0x237   : > { %p2201_p7 = pnand %p2200_p4, %p2324_p5 }
 0x238   : > { %p2206_p11 = por %p2205_p10, %p2204_p9 }
 0x239   : > { %p2202_p8 = pneg %p2201_p7 }
 0x23b   : > { %p2207_p12 = pnand %p2206_p11, %p2202_p8 }
 0x23d   : > { %2210 = shalt.err (!%p2207_p12)
}
 0x23e   : > { %s2259_s28 = smov 64   ;;  %s2260_s12 = smov 4  }
 0x23f   : > { %2121 = dma.vmem_to_hbm [thread:$0]  (%p2324_p5), %s2905_s14, 256, %s2903_s23, %s2911_s29, %s2259_s28, %s2259_s28, %s2260_s12  }
 0x240 PF: > { %p2127_p13 = scmp.ge.s32.totalorder %s2245_s18, 2  ;;  %s1911_s13 = sand.u32 1, %s2233_s15  }
 0x241   : > { %s1912_s20 = scalar_lea.sflag [#allocation3], %s1911_s13 }
 0x242   : > { %p2124_p0 = pnand %p2127_p13, %p2328_p6 }
 0x244   : > { %p2125_p1 = pneg %p2124_p0 }
 0x246   : > { %2228 = dma.done.wait (%p2125_p1), %s1912_s20, 256  }
 0x247   : > { %2230 = vsyncadd (%p2125_p1), %s1912_s20, 4294967040  ;;  %p15_p2 = scmp.ge.s32.totalorder %s2311_s21, 4   ;;  %s2960_s15 = smov %s2237_s16 }
 0x248   : > { %s2961_s16 = smov %s2241_s17  ;;  %s2962_s17 = smov %s2322_s24 }
 0x249   : > { %s2963_s18 = smov %s2311_s21  ;;  %17 = sbr.rel (!%p15_p2) target bundleno = 3 (0x3), region = 79 }
 0x24e   :  { %1917 = vsyncpa [#allocation3], 1 }
 0x24f   :  { %1919 = vsyncpa [#allocation3 + $0x1], 1 }

</bundles_post_ra>
